<compile_context>
chip_gen: v7x
topology: tpu7x:2x2x1
jax: 0.10.0
libtpu: 0.0.40
codegen_flags: <defaults>
</compile_context>

<pallas_src>
import functools

import jax
import jax.numpy as jnp
import numpy as np
from jax import lax
from jax.experimental import pallas as pl
from jax.experimental.pallas import tpu as pltpu

LN_EPS = 1e-5  # torch.nn.LayerNorm default


def _layer_norm(y, gamma, beta):
    mean = jnp.mean(y, axis=-1, keepdims=True)
    var = jnp.mean((y - mean) ** 2, axis=-1, keepdims=True)
    return (y - mean) * lax.rsqrt(var + LN_EPS) * gamma + beta


def encoder_layer_kernel(
    x_ref,
    wq_ref, bq_ref, wk_ref, bk_ref, wv_ref, bv_ref, wo_ref, bo_ref,
    w1_ref, b1_ref, w2_ref, b2_ref,
    gamma_ref, beta_ref,
    o_ref,
    *, heads: int,
):
    bt, S, E = x_ref.shape
    dk = E // heads
    R = bt * S                               # all rows of this batch-tile

    x2 = x_ref[...].reshape(R, E)            # (R, E) f32; residual path stays f32
    xb = x2.astype(jnp.bfloat16)

    gamma = gamma_ref[...]                   # (1, E) f32
    beta = beta_ref[...]                     # (1, E) f32

    # ---- multi-head self-attention --------------------------------------
    # Projections: bf16 operands, f32 accumulation.  1/sqrt(dk) is already
    # folded into wq/bq by the wrapper.
    q = jnp.dot(xb, wq_ref[...], preferred_element_type=jnp.float32) + bq_ref[...]
    k = jnp.dot(xb, wk_ref[...], preferred_element_type=jnp.float32) + bk_ref[...]
    v = jnp.dot(xb, wv_ref[...], preferred_element_type=jnp.float32) + bv_ref[...]

    q3 = q.reshape(bt, S, E).astype(jnp.bfloat16)
    k3 = k.reshape(bt, S, E).astype(jnp.bfloat16)
    v3 = v.reshape(bt, S, E).astype(jnp.bfloat16)

    wo = wo_ref[...]                         # (E, E) f32; rows sliced per head

    # Output projection distributed over heads: attn = sum_h ctx_h @ Wo[h] + bo
    # -> no head concat, no extra scratch.
    attn = jnp.zeros((R, E), jnp.float32)
    for h in range(heads):                   # static unroll; all batches per pass
        sl = slice(h * dk, (h + 1) * dk)
        qh, kh, vh = q3[:, :, sl], k3[:, :, sl], v3[:, :, sl]
        # scores for all batch elements of the tile at once: (bt, S, S)
        s = jnp.einsum("bqd,bkd->bqk", qh, kh,
                       preferred_element_type=jnp.float32)
        s = s - jnp.max(s, axis=-1, keepdims=True)
        p = jnp.exp(s)
        p = p * pl.reciprocal(jnp.sum(p, axis=-1, keepdims=True), approx=True)
        ctx = jnp.einsum("bqk,bkd->bqd", p.astype(jnp.bfloat16), vh,
                         preferred_element_type=jnp.float32)     # (bt, S, dk)
        attn = attn + jnp.dot(ctx.reshape(R, dk).astype(jnp.bfloat16),
                              wo[sl, :].astype(jnp.bfloat16),
                              preferred_element_type=jnp.float32)
    attn = attn + bo_ref[...]

    # residual + layernorm (dropout == identity in eval)
    x1 = _layer_norm(x2 + attn, gamma, beta)

    # ---- feed-forward -----------------------------------------------------
    h1 = jnp.maximum(
        jnp.dot(x1.astype(jnp.bfloat16), w1_ref[...],
                preferred_element_type=jnp.float32) + b1_ref[...],
        0.0)
    ff = jnp.dot(h1.astype(jnp.bfloat16), w2_ref[...],
                 preferred_element_type=jnp.float32) + b2_ref[...]

    # residual + the SAME layernorm (module reuses self.norm)
    o_ref[...] = _layer_norm(x1 + ff, gamma, beta).reshape(bt, S, E)


def encoder_layer(x, params, *, heads, batch_tile=None):
    """x: (B, S, E) float32.  params: dict of pre-transposed f32 weights."""
    B, S, E = x.shape
    d_ff = params["w1"].shape[1]
    dk = E // heads
    scale = 1.0 / (dk ** 0.5)

    if batch_tile is None:
        batch_tile = B          # one grid step: all B*S rows feed the MXU together
    assert B % batch_tile == 0, "batch_tile must divide B"
    nb = B // batch_tile        # set batch_tile=B//2 on v7x for a 2-way parallel axis

    # --- parameter prep: fold the attention scale into Wq/bq, cast matmul
    # weights to bf16 (biases / layernorm params stay f32 for f32 adds).
    bf = lambda w: w.astype(jnp.bfloat16)
    prep = (
        bf(params["wq"] * scale), params["bq"] * scale,
        bf(params["wk"]), params["bk"],
        bf(params["wv"]), params["bv"],
        params["wo"], params["bo"],        # wo kept f32: sliced per head in-kernel
        bf(params["w1"]), params["b1"],
        bf(params["w2"]), params["b2"],
        params["gamma"], params["beta"],
    )

    full = lambda shape: pl.BlockSpec(shape, lambda b: (0,) * len(shape))
    kernel = functools.partial(encoder_layer_kernel, heads=heads)

    # Advisory cost hint for XLA scheduling around the custom call.
    flops = (8 * B * S * E * E              # q/k/v/out projections
             + 4 * B * heads * S * S * dk   # QK^T + PV
             + 4 * B * S * E * d_ff)        # fc1 + fc2
    transcendentals = B * heads * S * S + 2 * B * S
    bytes_accessed = int(
        2 * B * S * E * 4
        + sum(int(p.size) * p.dtype.itemsize for p in prep))

    return pl.pallas_call(
        kernel,
        out_shape=jax.ShapeDtypeStruct((B, S, E), jnp.float32),
        grid_spec=pltpu.PrefetchScalarGridSpec(
            num_scalar_prefetch=0,
            grid=(nb,),
            in_specs=[
                pl.BlockSpec((batch_tile, S, E), lambda b: (b, 0, 0)),  # x
                full((E, E)), full((1, E)),                     # Wq, bq (pre-scaled)
                full((E, E)), full((1, E)),                     # Wk, bk
                full((E, E)), full((1, E)),                     # Wv, bv
                full((E, E)), full((1, E)),                     # Wo, bo
                full((E, d_ff)), full((1, d_ff)),               # W1, b1
                full((d_ff, E)), full((1, E)),                  # W2, b2
                full((1, E)), full((1, E)),                     # gamma, beta
            ],
            out_specs=pl.BlockSpec((batch_tile, S, E), lambda b: (b, 0, 0)),
        ),
        compiler_params=pltpu.CompilerParams(
            dimension_semantics=("parallel",),
            vmem_limit_bytes=32 * 1024 * 1024),
        cost_estimate=pl.CostEstimate(
            flops=flops, transcendentals=transcendentals,
            bytes_accessed=bytes_accessed),
    )(x, *prep)


# ----------------------- pure-JAX reference (for checking) -----------------
def encoder_layer_ref(x, p, *, heads):
    B, S, E = x.shape
    d_k = E // heads

    def ln(y):
        m = jnp.mean(y, axis=-1, keepdims=True)
        v = jnp.mean((y - m) ** 2, axis=-1, keepdims=True)
        return (y - m) / jnp.sqrt(v + LN_EPS) * p["gamma"] + p["beta"]

    q = x @ p["wq"] + p["bq"]
    k = x @ p["wk"] + p["bk"]
    v = x @ p["wv"] + p["bv"]
    q = q.reshape(B, S, heads, d_k).transpose(0, 2, 1, 3)
    k = k.reshape(B, S, heads, d_k).transpose(0, 2, 1, 3)
    v = v.reshape(B, S, heads, d_k).transpose(0, 2, 1, 3)
    s = jnp.einsum("bhqd,bhkd->bhqk", q, k) / (d_k ** 0.5)
    s = jax.nn.softmax(s, axis=-1)
    ctx = jnp.einsum("bhqk,bhkd->bhqd", s, v)
    ctx = ctx.transpose(0, 2, 1, 3).reshape(B, S, E)
    attn = ctx @ p["wo"] + p["bo"]
    x1 = ln(x + attn)
    ff = jnp.maximum(x1 @ p["w1"] + p["b1"], 0.0) @ p["w2"] + p["b2"]
    return ln(x1 + ff)


def init_params(key, embed_size, d_ff):
    ks = jax.random.split(key, 12)
    r = lambda k, shape: (jax.random.normal(k, shape, jnp.float32) * 0.05)
    return {
        # pre-transposed to (in, out)
        "wq": r(ks[0], (embed_size, embed_size)), "bq": r(ks[1], (1, embed_size)),
        "wk": r(ks[2], (embed_size, embed_size)), "bk": r(ks[3], (1, embed_size)),
        "wv": r(ks[4], (embed_size, embed_size)), "bv": r(ks[5], (1, embed_size)),
        "wo": r(ks[6], (embed_size, embed_size)), "bo": r(ks[7], (1, embed_size)),
        "w1": r(ks[8], (embed_size, d_ff)),       "b1": r(ks[9], (1, d_ff)),
        "w2": r(ks[10], (d_ff, embed_size)),      "b2": r(ks[11], (1, embed_size)),
        # nn.LayerNorm default init
        "gamma": jnp.ones((1, embed_size), jnp.float32),
        "beta": jnp.zeros((1, embed_size), jnp.float32),
    }


if __name__ == "__main__":
    B, S, E, HEADS, D_FF = 2, 8, 32, 4, 2048  # d_ff=2048 is FeedForward's default

    key = jax.random.PRNGKey(0)
    kx, kp = jax.random.split(key)
    x = jax.random.normal(kx, (B, S, E), jnp.float32)
    params = init_params(kp, E, D_FF)

    # TODO(synk): dropout is identity (inference); training-mode dropout masks
    # are not implemented in the kernel.
    out = encoder_layer(x, params, heads=HEADS)
    out = jax.block_until_ready(out)

    ref = encoder_layer_ref(x, params, heads=HEADS)
    # Kernel uses bf16 matmul operands with f32 accumulation (per perf review),
    # so compare against the f32 reference at bf16-appropriate tolerance.
    np.testing.assert_allclose(np.asarray(out), np.asarray(ref), rtol=2e-2, atol=2e-2)

    print("KERNEL_OK")
</pallas_src>

<mosaic_0001>
module attributes {stable_mosaic.version = 11 : i64} {
  func.func @encoder_layer_kernel(%arg0: i32, %arg1: memref<2x8x32xf32, #tpu.memory_space<vmem>>, %arg2: memref<32x32xbf16, #tpu.memory_space<vmem>>, %arg3: memref<1x32xf32, #tpu.memory_space<vmem>>, %arg4: memref<32x32xbf16, #tpu.memory_space<vmem>>, %arg5: memref<1x32xf32, #tpu.memory_space<vmem>>, %arg6: memref<32x32xbf16, #tpu.memory_space<vmem>>, %arg7: memref<1x32xf32, #tpu.memory_space<vmem>>, %arg8: memref<32x32xf32, #tpu.memory_space<vmem>>, %arg9: memref<1x32xf32, #tpu.memory_space<vmem>>, %arg10: memref<32x2048xbf16, #tpu.memory_space<vmem>>, %arg11: memref<1x2048xf32, #tpu.memory_space<vmem>>, %arg12: memref<2048x32xbf16, #tpu.memory_space<vmem>>, %arg13: memref<1x32xf32, #tpu.memory_space<vmem>>, %arg14: memref<1x32xf32, #tpu.memory_space<vmem>>, %arg15: memref<1x32xf32, #tpu.memory_space<vmem>>, %arg16: memref<2x8x32xf32, #tpu.memory_space<vmem>>) attributes {dimension_semantics = [#tpu.dimension_semantics<parallel>], iteration_bounds = array<i64: 1>, scalar_prefetch = 0 : i64, scratch_operands = 0 : i64, tpu.core_type = #tpu.core_type<tc>, window_params = [{transform_indices = @transform_0, window_bounds = array<i64: 2, 8, 32>}, {pipeline_mode = #tpu.pipeline_mode<synchronous>, transform_indices = @transform_1, window_bounds = array<i64: 32, 32>}, {pipeline_mode = #tpu.pipeline_mode<synchronous>, transform_indices = @transform_2, window_bounds = array<i64: 1, 32>}, {pipeline_mode = #tpu.pipeline_mode<synchronous>, transform_indices = @transform_3, window_bounds = array<i64: 32, 32>}, {pipeline_mode = #tpu.pipeline_mode<synchronous>, transform_indices = @transform_4, window_bounds = array<i64: 1, 32>}, {pipeline_mode = #tpu.pipeline_mode<synchronous>, transform_indices = @transform_5, window_bounds = array<i64: 32, 32>}, {pipeline_mode = #tpu.pipeline_mode<synchronous>, transform_indices = @transform_6, window_bounds = array<i64: 1, 32>}, {pipeline_mode = #tpu.pipeline_mode<synchronous>, transform_indices = @transform_7, window_bounds = array<i64: 32, 32>}, {pipeline_mode = #tpu.pipeline_mode<synchronous>, transform_indices = @transform_8, window_bounds = array<i64: 1, 32>}, {pipeline_mode = #tpu.pipeline_mode<synchronous>, transform_indices = @transform_9, window_bounds = array<i64: 32, 2048>}, {pipeline_mode = #tpu.pipeline_mode<synchronous>, transform_indices = @transform_10, window_bounds = array<i64: 1, 2048>}, {pipeline_mode = #tpu.pipeline_mode<synchronous>, transform_indices = @transform_11, window_bounds = array<i64: 2048, 32>}, {pipeline_mode = #tpu.pipeline_mode<synchronous>, transform_indices = @transform_12, window_bounds = array<i64: 1, 32>}, {pipeline_mode = #tpu.pipeline_mode<synchronous>, transform_indices = @transform_13, window_bounds = array<i64: 1, 32>}, {pipeline_mode = #tpu.pipeline_mode<synchronous>, transform_indices = @transform_14, window_bounds = array<i64: 1, 32>}, {transform_indices = @transform_15, window_bounds = array<i64: 2, 8, 32>}]} {
    %c0 = arith.constant 0 : index
    %c0_0 = arith.constant 0 : index
    %c0_1 = arith.constant 0 : index
    %0 = vector.load %arg1[%c0, %c0_0, %c0_1] : memref<2x8x32xf32, #tpu.memory_space<vmem>>, vector<2x8x32xf32>
    %1 = vector.shape_cast %0 : vector<2x8x32xf32> to vector<16x32xf32>
    %2 = arith.truncf %1 : vector<16x32xf32> to vector<16x32xbf16>
    %c0_2 = arith.constant 0 : index
    %c0_3 = arith.constant 0 : index
    %3 = vector.load %arg14[%c0_2, %c0_3] : memref<1x32xf32, #tpu.memory_space<vmem>>, vector<1x32xf32>
    %c0_4 = arith.constant 0 : index
    %c0_5 = arith.constant 0 : index
    %4 = vector.load %arg15[%c0_4, %c0_5] : memref<1x32xf32, #tpu.memory_space<vmem>>, vector<1x32xf32>
    %c0_6 = arith.constant 0 : index
    %c0_7 = arith.constant 0 : index
    %5 = vector.load %arg2[%c0_6, %c0_7] : memref<32x32xbf16, #tpu.memory_space<vmem>>, vector<32x32xbf16>
    %cst = arith.constant dense<0.000000e+00> : vector<16x32xf32>
    %6 = tpu.matmul %2, %5, %cst {dimension_numbers = #tpu.dot_dimension_numbers<[1], [0], [0], [1], [0, 0, 1, 1], [], []>} : vector<16x32xbf16>, vector<32x32xbf16>, vector<16x32xf32> -> vector<16x32xf32>
    %c0_8 = arith.constant 0 : index
    %c0_9 = arith.constant 0 : index
    %7 = vector.load %arg3[%c0_8, %c0_9] : memref<1x32xf32, #tpu.memory_space<vmem>>, vector<1x32xf32>
    %8 = vector.broadcast %7 : vector<1x32xf32> to vector<16x32xf32>
    %9 = arith.addf %6, %8 : vector<16x32xf32>
    %c0_10 = arith.constant 0 : index
    %c0_11 = arith.constant 0 : index
    %10 = vector.load %arg4[%c0_10, %c0_11] : memref<32x32xbf16, #tpu.memory_space<vmem>>, vector<32x32xbf16>
    %cst_12 = arith.constant dense<0.000000e+00> : vector<16x32xf32>
    %11 = tpu.matmul %2, %10, %cst_12 {dimension_numbers = #tpu.dot_dimension_numbers<[1], [0], [0], [1], [0, 0, 1, 1], [], []>} : vector<16x32xbf16>, vector<32x32xbf16>, vector<16x32xf32> -> vector<16x32xf32>
    %c0_13 = arith.constant 0 : index
    %c0_14 = arith.constant 0 : index
    %12 = vector.load %arg5[%c0_13, %c0_14] : memref<1x32xf32, #tpu.memory_space<vmem>>, vector<1x32xf32>
    %13 = vector.broadcast %12 : vector<1x32xf32> to vector<16x32xf32>
    %14 = arith.addf %11, %13 : vector<16x32xf32>
    %c0_15 = arith.constant 0 : index
    %c0_16 = arith.constant 0 : index
    %15 = vector.load %arg6[%c0_15, %c0_16] : memref<32x32xbf16, #tpu.memory_space<vmem>>, vector<32x32xbf16>
    %cst_17 = arith.constant dense<0.000000e+00> : vector<16x32xf32>
    %16 = tpu.matmul %2, %15, %cst_17 {dimension_numbers = #tpu.dot_dimension_numbers<[1], [0], [0], [1], [0, 0, 1, 1], [], []>} : vector<16x32xbf16>, vector<32x32xbf16>, vector<16x32xf32> -> vector<16x32xf32>
    %c0_18 = arith.constant 0 : index
    %c0_19 = arith.constant 0 : index
    %17 = vector.load %arg7[%c0_18, %c0_19] : memref<1x32xf32, #tpu.memory_space<vmem>>, vector<1x32xf32>
    %18 = vector.broadcast %17 : vector<1x32xf32> to vector<16x32xf32>
    %19 = arith.addf %16, %18 : vector<16x32xf32>
    %20 = vector.shape_cast %9 : vector<16x32xf32> to vector<2x8x32xf32>
    %21 = arith.truncf %20 : vector<2x8x32xf32> to vector<2x8x32xbf16>
    %22 = vector.shape_cast %14 : vector<16x32xf32> to vector<2x8x32xf32>
    %23 = arith.truncf %22 : vector<2x8x32xf32> to vector<2x8x32xbf16>
    %24 = vector.shape_cast %19 : vector<16x32xf32> to vector<2x8x32xf32>
    %25 = arith.truncf %24 : vector<2x8x32xf32> to vector<2x8x32xbf16>
    %c0_20 = arith.constant 0 : index
    %c0_21 = arith.constant 0 : index
    %26 = vector.load %arg8[%c0_20, %c0_21] : memref<32x32xf32, #tpu.memory_space<vmem>>, vector<32x32xf32>
    %cst_22 = arith.constant 0.000000e+00 : f32
    %27 = vector.broadcast %cst_22 : f32 to vector<16x32xf32>
    %28 = vector.extract_strided_slice %21 {offsets = [0, 0, 0], sizes = [2, 8, 8], strides = [1, 1, 1]} : vector<2x8x32xbf16> to vector<2x8x8xbf16>
    %29 = vector.extract_strided_slice %23 {offsets = [0, 0, 0], sizes = [2, 8, 8], strides = [1, 1, 1]} : vector<2x8x32xbf16> to vector<2x8x8xbf16>
    %30 = vector.extract_strided_slice %25 {offsets = [0, 0, 0], sizes = [2, 8, 8], strides = [1, 1, 1]} : vector<2x8x32xbf16> to vector<2x8x8xbf16>
    "tpu.trace_start"() <{level = 10 : i32, message = "bqd,bkd->bqk"}> : () -> ()
    %cst_23 = arith.constant dense<0.000000e+00> : vector<2x8x8xf32>
    %31 = tpu.matmul %28, %29, %cst_23 {dimension_numbers = #tpu.dot_dimension_numbers<[2], [2], [1], [1], [0, 0, 0, 1, 1, 1], [0], [0]>} : vector<2x8x8xbf16>, vector<2x8x8xbf16>, vector<2x8x8xf32> -> vector<2x8x8xf32>
    "tpu.trace_stop"() : () -> ()
    %cst_24 = arith.constant dense<0xFF800000> : vector<2x8xf32>
    %32 = vector.multi_reduction <maximumf>, %31, %cst_24 [2] : vector<2x8x8xf32> to vector<2x8xf32>
    %33 = vector.shape_cast %32 : vector<2x8xf32> to vector<2x8x1xf32>
    %34 = vector.broadcast %33 : vector<2x8x1xf32> to vector<2x8x8xf32>
    %35 = arith.subf %31, %34 : vector<2x8x8xf32>
    %36 = math.exp %35 : vector<2x8x8xf32>
    %cst_25 = arith.constant dense<0.000000e+00> : vector<2x8xf32>
    %37 = vector.multi_reduction <add>, %36, %cst_25 [2] : vector<2x8x8xf32> to vector<2x8xf32>
    %38 = vector.shape_cast %37 : vector<2x8xf32> to vector<2x8x1xf32>
    %39 = tpu.reciprocal %38 {approx = true} : vector<2x8x1xf32> -> vector<2x8x1xf32>
    %40 = vector.broadcast %39 : vector<2x8x1xf32> to vector<2x8x8xf32>
    %41 = arith.mulf %36, %40 : vector<2x8x8xf32>
    %42 = arith.truncf %41 : vector<2x8x8xf32> to vector<2x8x8xbf16>
    "tpu.trace_start"() <{level = 10 : i32, message = "bqk,bkd->bqd"}> : () -> ()
    %cst_26 = arith.constant dense<0.000000e+00> : vector<2x8x8xf32>
    %43 = tpu.matmul %42, %30, %cst_26 {dimension_numbers = #tpu.dot_dimension_numbers<[2], [1], [1], [2], [0, 0, 0, 1, 1, 2], [0], [0]>} : vector<2x8x8xbf16>, vector<2x8x8xbf16>, vector<2x8x8xf32> -> vector<2x8x8xf32>
    "tpu.trace_stop"() : () -> ()
    %44 = vector.shape_cast %43 : vector<2x8x8xf32> to vector<16x8xf32>
    %45 = arith.truncf %44 : vector<16x8xf32> to vector<16x8xbf16>
    %46 = vector.extract_strided_slice %26 {offsets = [0, 0], sizes = [8, 32], strides = [1, 1]} : vector<32x32xf32> to vector<8x32xf32>
    %47 = arith.truncf %46 : vector<8x32xf32> to vector<8x32xbf16>
    %cst_27 = arith.constant dense<0.000000e+00> : vector<16x32xf32>
    %48 = tpu.matmul %45, %47, %cst_27 {dimension_numbers = #tpu.dot_dimension_numbers<[1], [0], [0], [1], [0, 0, 1, 1], [], []>} : vector<16x8xbf16>, vector<8x32xbf16>, vector<16x32xf32> -> vector<16x32xf32>
    %49 = arith.addf %27, %48 : vector<16x32xf32>
    %50 = vector.extract_strided_slice %21 {offsets = [0, 0, 8], sizes = [2, 8, 8], strides = [1, 1, 1]} : vector<2x8x32xbf16> to vector<2x8x8xbf16>
    %51 = vector.extract_strided_slice %23 {offsets = [0, 0, 8], sizes = [2, 8, 8], strides = [1, 1, 1]} : vector<2x8x32xbf16> to vector<2x8x8xbf16>
    %52 = vector.extract_strided_slice %25 {offsets = [0, 0, 8], sizes = [2, 8, 8], strides = [1, 1, 1]} : vector<2x8x32xbf16> to vector<2x8x8xbf16>
    "tpu.trace_start"() <{level = 10 : i32, message = "bqd,bkd->bqk"}> : () -> ()
    %cst_28 = arith.constant dense<0.000000e+00> : vector<2x8x8xf32>
    %53 = tpu.matmul %50, %51, %cst_28 {dimension_numbers = #tpu.dot_dimension_numbers<[2], [2], [1], [1], [0, 0, 0, 1, 1, 1], [0], [0]>} : vector<2x8x8xbf16>, vector<2x8x8xbf16>, vector<2x8x8xf32> -> vector<2x8x8xf32>
    "tpu.trace_stop"() : () -> ()
    %cst_29 = arith.constant dense<0xFF800000> : vector<2x8xf32>
    %54 = vector.multi_reduction <maximumf>, %53, %cst_29 [2] : vector<2x8x8xf32> to vector<2x8xf32>
    %55 = vector.shape_cast %54 : vector<2x8xf32> to vector<2x8x1xf32>
    %56 = vector.broadcast %55 : vector<2x8x1xf32> to vector<2x8x8xf32>
    %57 = arith.subf %53, %56 : vector<2x8x8xf32>
    %58 = math.exp %57 : vector<2x8x8xf32>
    %cst_30 = arith.constant dense<0.000000e+00> : vector<2x8xf32>
    %59 = vector.multi_reduction <add>, %58, %cst_30 [2] : vector<2x8x8xf32> to vector<2x8xf32>
    %60 = vector.shape_cast %59 : vector<2x8xf32> to vector<2x8x1xf32>
    %61 = tpu.reciprocal %60 {approx = true} : vector<2x8x1xf32> -> vector<2x8x1xf32>
    %62 = vector.broadcast %61 : vector<2x8x1xf32> to vector<2x8x8xf32>
    %63 = arith.mulf %58, %62 : vector<2x8x8xf32>
    %64 = arith.truncf %63 : vector<2x8x8xf32> to vector<2x8x8xbf16>
    "tpu.trace_start"() <{level = 10 : i32, message = "bqk,bkd->bqd"}> : () -> ()
    %cst_31 = arith.constant dense<0.000000e+00> : vector<2x8x8xf32>
    %65 = tpu.matmul %64, %52, %cst_31 {dimension_numbers = #tpu.dot_dimension_numbers<[2], [1], [1], [2], [0, 0, 0, 1, 1, 2], [0], [0]>} : vector<2x8x8xbf16>, vector<2x8x8xbf16>, vector<2x8x8xf32> -> vector<2x8x8xf32>
    "tpu.trace_stop"() : () -> ()
    %66 = vector.shape_cast %65 : vector<2x8x8xf32> to vector<16x8xf32>
    %67 = arith.truncf %66 : vector<16x8xf32> to vector<16x8xbf16>
    %68 = vector.extract_strided_slice %26 {offsets = [8, 0], sizes = [8, 32], strides = [1, 1]} : vector<32x32xf32> to vector<8x32xf32>
    %69 = arith.truncf %68 : vector<8x32xf32> to vector<8x32xbf16>
    %cst_32 = arith.constant dense<0.000000e+00> : vector<16x32xf32>
    %70 = tpu.matmul %67, %69, %cst_32 {dimension_numbers = #tpu.dot_dimension_numbers<[1], [0], [0], [1], [0, 0, 1, 1], [], []>} : vector<16x8xbf16>, vector<8x32xbf16>, vector<16x32xf32> -> vector<16x32xf32>
    %71 = arith.addf %49, %70 : vector<16x32xf32>
    %72 = vector.extract_strided_slice %21 {offsets = [0, 0, 16], sizes = [2, 8, 8], strides = [1, 1, 1]} : vector<2x8x32xbf16> to vector<2x8x8xbf16>
    %73 = vector.extract_strided_slice %23 {offsets = [0, 0, 16], sizes = [2, 8, 8], strides = [1, 1, 1]} : vector<2x8x32xbf16> to vector<2x8x8xbf16>
    %74 = vector.extract_strided_slice %25 {offsets = [0, 0, 16], sizes = [2, 8, 8], strides = [1, 1, 1]} : vector<2x8x32xbf16> to vector<2x8x8xbf16>
    "tpu.trace_start"() <{level = 10 : i32, message = "bqd,bkd->bqk"}> : () -> ()
    %cst_33 = arith.constant dense<0.000000e+00> : vector<2x8x8xf32>
    %75 = tpu.matmul %72, %73, %cst_33 {dimension_numbers = #tpu.dot_dimension_numbers<[2], [2], [1], [1], [0, 0, 0, 1, 1, 1], [0], [0]>} : vector<2x8x8xbf16>, vector<2x8x8xbf16>, vector<2x8x8xf32> -> vector<2x8x8xf32>
    "tpu.trace_stop"() : () -> ()
    %cst_34 = arith.constant dense<0xFF800000> : vector<2x8xf32>
    %76 = vector.multi_reduction <maximumf>, %75, %cst_34 [2] : vector<2x8x8xf32> to vector<2x8xf32>
    %77 = vector.shape_cast %76 : vector<2x8xf32> to vector<2x8x1xf32>
    %78 = vector.broadcast %77 : vector<2x8x1xf32> to vector<2x8x8xf32>
    %79 = arith.subf %75, %78 : vector<2x8x8xf32>
    %80 = math.exp %79 : vector<2x8x8xf32>
    %cst_35 = arith.constant dense<0.000000e+00> : vector<2x8xf32>
    %81 = vector.multi_reduction <add>, %80, %cst_35 [2] : vector<2x8x8xf32> to vector<2x8xf32>
    %82 = vector.shape_cast %81 : vector<2x8xf32> to vector<2x8x1xf32>
    %83 = tpu.reciprocal %82 {approx = true} : vector<2x8x1xf32> -> vector<2x8x1xf32>
    %84 = vector.broadcast %83 : vector<2x8x1xf32> to vector<2x8x8xf32>
    %85 = arith.mulf %80, %84 : vector<2x8x8xf32>
    %86 = arith.truncf %85 : vector<2x8x8xf32> to vector<2x8x8xbf16>
    "tpu.trace_start"() <{level = 10 : i32, message = "bqk,bkd->bqd"}> : () -> ()
    %cst_36 = arith.constant dense<0.000000e+00> : vector<2x8x8xf32>
    %87 = tpu.matmul %86, %74, %cst_36 {dimension_numbers = #tpu.dot_dimension_numbers<[2], [1], [1], [2], [0, 0, 0, 1, 1, 2], [0], [0]>} : vector<2x8x8xbf16>, vector<2x8x8xbf16>, vector<2x8x8xf32> -> vector<2x8x8xf32>
    "tpu.trace_stop"() : () -> ()
    %88 = vector.shape_cast %87 : vector<2x8x8xf32> to vector<16x8xf32>
    %89 = arith.truncf %88 : vector<16x8xf32> to vector<16x8xbf16>
    %90 = vector.extract_strided_slice %26 {offsets = [16, 0], sizes = [8, 32], strides = [1, 1]} : vector<32x32xf32> to vector<8x32xf32>
    %91 = arith.truncf %90 : vector<8x32xf32> to vector<8x32xbf16>
    %cst_37 = arith.constant dense<0.000000e+00> : vector<16x32xf32>
    %92 = tpu.matmul %89, %91, %cst_37 {dimension_numbers = #tpu.dot_dimension_numbers<[1], [0], [0], [1], [0, 0, 1, 1], [], []>} : vector<16x8xbf16>, vector<8x32xbf16>, vector<16x32xf32> -> vector<16x32xf32>
    %93 = arith.addf %71, %92 : vector<16x32xf32>
    %94 = vector.extract_strided_slice %21 {offsets = [0, 0, 24], sizes = [2, 8, 8], strides = [1, 1, 1]} : vector<2x8x32xbf16> to vector<2x8x8xbf16>
    %95 = vector.extract_strided_slice %23 {offsets = [0, 0, 24], sizes = [2, 8, 8], strides = [1, 1, 1]} : vector<2x8x32xbf16> to vector<2x8x8xbf16>
    %96 = vector.extract_strided_slice %25 {offsets = [0, 0, 24], sizes = [2, 8, 8], strides = [1, 1, 1]} : vector<2x8x32xbf16> to vector<2x8x8xbf16>
    "tpu.trace_start"() <{level = 10 : i32, message = "bqd,bkd->bqk"}> : () -> ()
    %cst_38 = arith.constant dense<0.000000e+00> : vector<2x8x8xf32>
    %97 = tpu.matmul %94, %95, %cst_38 {dimension_numbers = #tpu.dot_dimension_numbers<[2], [2], [1], [1], [0, 0, 0, 1, 1, 1], [0], [0]>} : vector<2x8x8xbf16>, vector<2x8x8xbf16>, vector<2x8x8xf32> -> vector<2x8x8xf32>
    "tpu.trace_stop"() : () -> ()
    %cst_39 = arith.constant dense<0xFF800000> : vector<2x8xf32>
    %98 = vector.multi_reduction <maximumf>, %97, %cst_39 [2] : vector<2x8x8xf32> to vector<2x8xf32>
    %99 = vector.shape_cast %98 : vector<2x8xf32> to vector<2x8x1xf32>
    %100 = vector.broadcast %99 : vector<2x8x1xf32> to vector<2x8x8xf32>
    %101 = arith.subf %97, %100 : vector<2x8x8xf32>
    %102 = math.exp %101 : vector<2x8x8xf32>
    %cst_40 = arith.constant dense<0.000000e+00> : vector<2x8xf32>
    %103 = vector.multi_reduction <add>, %102, %cst_40 [2] : vector<2x8x8xf32> to vector<2x8xf32>
    %104 = vector.shape_cast %103 : vector<2x8xf32> to vector<2x8x1xf32>
    %105 = tpu.reciprocal %104 {approx = true} : vector<2x8x1xf32> -> vector<2x8x1xf32>
    %106 = vector.broadcast %105 : vector<2x8x1xf32> to vector<2x8x8xf32>
    %107 = arith.mulf %102, %106 : vector<2x8x8xf32>
    %108 = arith.truncf %107 : vector<2x8x8xf32> to vector<2x8x8xbf16>
    "tpu.trace_start"() <{level = 10 : i32, message = "bqk,bkd->bqd"}> : () -> ()
    %cst_41 = arith.constant dense<0.000000e+00> : vector<2x8x8xf32>
    %109 = tpu.matmul %108, %96, %cst_41 {dimension_numbers = #tpu.dot_dimension_numbers<[2], [1], [1], [2], [0, 0, 0, 1, 1, 2], [0], [0]>} : vector<2x8x8xbf16>, vector<2x8x8xbf16>, vector<2x8x8xf32> -> vector<2x8x8xf32>
    "tpu.trace_stop"() : () -> ()
    %110 = vector.shape_cast %109 : vector<2x8x8xf32> to vector<16x8xf32>
    %111 = arith.truncf %110 : vector<16x8xf32> to vector<16x8xbf16>
    %112 = vector.extract_strided_slice %26 {offsets = [24, 0], sizes = [8, 32], strides = [1, 1]} : vector<32x32xf32> to vector<8x32xf32>
    %113 = arith.truncf %112 : vector<8x32xf32> to vector<8x32xbf16>
    %cst_42 = arith.constant dense<0.000000e+00> : vector<16x32xf32>
    %114 = tpu.matmul %111, %113, %cst_42 {dimension_numbers = #tpu.dot_dimension_numbers<[1], [0], [0], [1], [0, 0, 1, 1], [], []>} : vector<16x8xbf16>, vector<8x32xbf16>, vector<16x32xf32> -> vector<16x32xf32>
    %115 = arith.addf %93, %114 : vector<16x32xf32>
    %c0_43 = arith.constant 0 : index
    %c0_44 = arith.constant 0 : index
    %116 = vector.load %arg9[%c0_43, %c0_44] : memref<1x32xf32, #tpu.memory_space<vmem>>, vector<1x32xf32>
    %117 = vector.broadcast %116 : vector<1x32xf32> to vector<16x32xf32>
    %118 = arith.addf %115, %117 : vector<16x32xf32>
    %119 = arith.addf %1, %118 : vector<16x32xf32>
    %cst_45 = arith.constant dense<0.000000e+00> : vector<16xf32>
    %120 = vector.multi_reduction <add>, %119, %cst_45 [1] : vector<16x32xf32> to vector<16xf32>
    %121 = vector.shape_cast %120 : vector<16xf32> to vector<16x1xf32>
    %cst_46 = arith.constant 3.200000e+01 : f32
    %122 = vector.broadcast %cst_46 : f32 to vector<16x1xf32>
    %123 = arith.divf %121, %122 : vector<16x1xf32>
    %124 = vector.broadcast %123 : vector<16x1xf32> to vector<16x32xf32>
    %125 = arith.subf %119, %124 : vector<16x32xf32>
    %126 = arith.mulf %125, %125 : vector<16x32xf32>
    %cst_47 = arith.constant dense<0.000000e+00> : vector<16xf32>
    %127 = vector.multi_reduction <add>, %126, %cst_47 [1] : vector<16x32xf32> to vector<16xf32>
    %128 = vector.shape_cast %127 : vector<16xf32> to vector<16x1xf32>
    %cst_48 = arith.constant 3.200000e+01 : f32
    %129 = vector.broadcast %cst_48 : f32 to vector<16x1xf32>
    %130 = arith.divf %128, %129 : vector<16x1xf32>
    %131 = vector.broadcast %123 : vector<16x1xf32> to vector<16x32xf32>
    %132 = arith.subf %119, %131 : vector<16x32xf32>
    %cst_49 = arith.constant 9.99999974E-6 : f32
    %133 = vector.broadcast %cst_49 : f32 to vector<16x1xf32>
    %134 = arith.addf %130, %133 : vector<16x1xf32>
    %135 = math.rsqrt %134 : vector<16x1xf32>
    %136 = vector.broadcast %135 : vector<16x1xf32> to vector<16x32xf32>
    %137 = arith.mulf %132, %136 : vector<16x32xf32>
    %138 = vector.broadcast %3 : vector<1x32xf32> to vector<16x32xf32>
    %139 = arith.mulf %137, %138 : vector<16x32xf32>
    %140 = vector.broadcast %4 : vector<1x32xf32> to vector<16x32xf32>
    %141 = arith.addf %139, %140 : vector<16x32xf32>
    %142 = arith.truncf %141 : vector<16x32xf32> to vector<16x32xbf16>
    %c0_50 = arith.constant 0 : index
    %c0_51 = arith.constant 0 : index
    %143 = vector.load %arg10[%c0_50, %c0_51] : memref<32x2048xbf16, #tpu.memory_space<vmem>>, vector<32x2048xbf16>
    %cst_52 = arith.constant dense<0.000000e+00> : vector<16x2048xf32>
    %144 = tpu.matmul %142, %143, %cst_52 {dimension_numbers = #tpu.dot_dimension_numbers<[1], [0], [0], [1], [0, 0, 1, 1], [], []>} : vector<16x32xbf16>, vector<32x2048xbf16>, vector<16x2048xf32> -> vector<16x2048xf32>
    %c0_53 = arith.constant 0 : index
    %c0_54 = arith.constant 0 : index
    %145 = vector.load %arg11[%c0_53, %c0_54] : memref<1x2048xf32, #tpu.memory_space<vmem>>, vector<1x2048xf32>
    %146 = vector.broadcast %145 : vector<1x2048xf32> to vector<16x2048xf32>
    %147 = arith.addf %144, %146 : vector<16x2048xf32>
    %cst_55 = arith.constant 0.000000e+00 : f32
    %148 = vector.broadcast %cst_55 : f32 to vector<16x2048xf32>
    %149 = arith.maximumf %147, %148 : vector<16x2048xf32>
    %150 = arith.truncf %149 : vector<16x2048xf32> to vector<16x2048xbf16>
    %c0_56 = arith.constant 0 : index
    %c0_57 = arith.constant 0 : index
    %151 = vector.load %arg12[%c0_56, %c0_57] : memref<2048x32xbf16, #tpu.memory_space<vmem>>, vector<2048x32xbf16>
    %cst_58 = arith.constant dense<0.000000e+00> : vector<16x32xf32>
    %152 = tpu.matmul %150, %151, %cst_58 {dimension_numbers = #tpu.dot_dimension_numbers<[1], [0], [0], [1], [0, 0, 1, 1], [], []>} : vector<16x2048xbf16>, vector<2048x32xbf16>, vector<16x32xf32> -> vector<16x32xf32>
    %c0_59 = arith.constant 0 : index
    %c0_60 = arith.constant 0 : index
    %153 = vector.load %arg13[%c0_59, %c0_60] : memref<1x32xf32, #tpu.memory_space<vmem>>, vector<1x32xf32>
    %154 = vector.broadcast %153 : vector<1x32xf32> to vector<16x32xf32>
    %155 = arith.addf %152, %154 : vector<16x32xf32>
    %156 = arith.addf %141, %155 : vector<16x32xf32>
    %cst_61 = arith.constant dense<0.000000e+00> : vector<16xf32>
    %157 = vector.multi_reduction <add>, %156, %cst_61 [1] : vector<16x32xf32> to vector<16xf32>
    %158 = vector.shape_cast %157 : vector<16xf32> to vector<16x1xf32>
    %cst_62 = arith.constant 3.200000e+01 : f32
    %159 = vector.broadcast %cst_62 : f32 to vector<16x1xf32>
    %160 = arith.divf %158, %159 : vector<16x1xf32>
    %161 = vector.broadcast %160 : vector<16x1xf32> to vector<16x32xf32>
    %162 = arith.subf %156, %161 : vector<16x32xf32>
    %163 = arith.mulf %162, %162 : vector<16x32xf32>
    %cst_63 = arith.constant dense<0.000000e+00> : vector<16xf32>
    %164 = vector.multi_reduction <add>, %163, %cst_63 [1] : vector<16x32xf32> to vector<16xf32>
    %165 = vector.shape_cast %164 : vector<16xf32> to vector<16x1xf32>
    %cst_64 = arith.constant 3.200000e+01 : f32
    %166 = vector.broadcast %cst_64 : f32 to vector<16x1xf32>
    %167 = arith.divf %165, %166 : vector<16x1xf32>
    %168 = vector.broadcast %160 : vector<16x1xf32> to vector<16x32xf32>
    %169 = arith.subf %156, %168 : vector<16x32xf32>
    %cst_65 = arith.constant 9.99999974E-6 : f32
    %170 = vector.broadcast %cst_65 : f32 to vector<16x1xf32>
    %171 = arith.addf %167, %170 : vector<16x1xf32>
    %172 = math.rsqrt %171 : vector<16x1xf32>
    %173 = vector.broadcast %172 : vector<16x1xf32> to vector<16x32xf32>
    %174 = arith.mulf %169, %173 : vector<16x32xf32>
    %175 = vector.broadcast %3 : vector<1x32xf32> to vector<16x32xf32>
    %176 = arith.mulf %174, %175 : vector<16x32xf32>
    %177 = vector.broadcast %4 : vector<1x32xf32> to vector<16x32xf32>
    %178 = arith.addf %176, %177 : vector<16x32xf32>
    %179 = vector.shape_cast %178 : vector<16x32xf32> to vector<2x8x32xf32>
    %c0_66 = arith.constant 0 : index
    %c0_67 = arith.constant 0 : index
    %c0_68 = arith.constant 0 : index
    %180 = vector.load %arg16[%c0_66, %c0_67, %c0_68] : memref<2x8x32xf32, #tpu.memory_space<vmem>>, vector<2x8x32xf32>
    tpu.vector_store %arg16[%c0_66, %c0_67, %c0_68], %179 {strides = array<i32>} : memref<2x8x32xf32, #tpu.memory_space<vmem>>, vector<2x8x32xf32>,
    return
  }
  func.func @transform_0(%arg0: i32) -> (i32, i32, i32) {
    %c0_i32 = arith.constant 0 : i32
    %c0_i32_0 = arith.constant 0 : i32
    %c0_i32_1 = arith.constant 0 : i32
    return %arg0, %c0_i32, %c0_i32_0 : i32, i32, i32
  }
  func.func @transform_1(%arg0: i32) -> (i32, i32) {
    %c0_i32 = arith.constant 0 : i32
    %c0_i32_0 = arith.constant 0 : i32
    %c0_i32_1 = arith.constant 0 : i32
    return %c0_i32, %c0_i32_0 : i32, i32
  }
  func.func @transform_2(%arg0: i32) -> (i32, i32) {
    %c0_i32 = arith.constant 0 : i32
    %c0_i32_0 = arith.constant 0 : i32
    %c0_i32_1 = arith.constant 0 : i32
    return %c0_i32, %c0_i32_0 : i32, i32
  }
  func.func @transform_3(%arg0: i32) -> (i32, i32) {
    %c0_i32 = arith.constant 0 : i32
    %c0_i32_0 = arith.constant 0 : i32
    %c0_i32_1 = arith.constant 0 : i32
    return %c0_i32, %c0_i32_0 : i32, i32
  }
  func.func @transform_4(%arg0: i32) -> (i32, i32) {
    %c0_i32 = arith.constant 0 : i32
    %c0_i32_0 = arith.constant 0 : i32
    %c0_i32_1 = arith.constant 0 : i32
    return %c0_i32, %c0_i32_0 : i32, i32
  }
  func.func @transform_5(%arg0: i32) -> (i32, i32) {
    %c0_i32 = arith.constant 0 : i32
    %c0_i32_0 = arith.constant 0 : i32
    %c0_i32_1 = arith.constant 0 : i32
    return %c0_i32, %c0_i32_0 : i32, i32
  }
  func.func @transform_6(%arg0: i32) -> (i32, i32) {
    %c0_i32 = arith.constant 0 : i32
    %c0_i32_0 = arith.constant 0 : i32
    %c0_i32_1 = arith.constant 0 : i32
    return %c0_i32, %c0_i32_0 : i32, i32
  }
  func.func @transform_7(%arg0: i32) -> (i32, i32) {
    %c0_i32 = arith.constant 0 : i32
    %c0_i32_0 = arith.constant 0 : i32
    %c0_i32_1 = arith.constant 0 : i32
    return %c0_i32, %c0_i32_0 : i32, i32
  }
  func.func @transform_8(%arg0: i32) -> (i32, i32) {
    %c0_i32 = arith.constant 0 : i32
    %c0_i32_0 = arith.constant 0 : i32
    %c0_i32_1 = arith.constant 0 : i32
    return %c0_i32, %c0_i32_0 : i32, i32
  }
  func.func @transform_9(%arg0: i32) -> (i32, i32) {
    %c0_i32 = arith.constant 0 : i32
    %c0_i32_0 = arith.constant 0 : i32
    %c0_i32_1 = arith.constant 0 : i32
    return %c0_i32, %c0_i32_0 : i32, i32
  }
  func.func @transform_10(%arg0: i32) -> (i32, i32) {
    %c0_i32 = arith.constant 0 : i32
    %c0_i32_0 = arith.constant 0 : i32
    %c0_i32_1 = arith.constant 0 : i32
    return %c0_i32, %c0_i32_0 : i32, i32
  }
  func.func @transform_11(%arg0: i32) -> (i32, i32) {
    %c0_i32 = arith.constant 0 : i32
    %c0_i32_0 = arith.constant 0 : i32
    %c0_i32_1 = arith.constant 0 : i32
    return %c0_i32, %c0_i32_0 : i32, i32
  }
  func.func @transform_12(%arg0: i32) -> (i32, i32) {
    %c0_i32 = arith.constant 0 : i32
    %c0_i32_0 = arith.constant 0 : i32
    %c0_i32_1 = arith.constant 0 : i32
    return %c0_i32, %c0_i32_0 : i32, i32
  }
  func.func @transform_13(%arg0: i32) -> (i32, i32) {
    %c0_i32 = arith.constant 0 : i32
    %c0_i32_0 = arith.constant 0 : i32
    %c0_i32_1 = arith.constant 0 : i32
    return %c0_i32, %c0_i32_0 : i32, i32
  }
  func.func @transform_14(%arg0: i32) -> (i32, i32) {
    %c0_i32 = arith.constant 0 : i32
    %c0_i32_0 = arith.constant 0 : i32
    %c0_i32_1 = arith.constant 0 : i32
    return %c0_i32, %c0_i32_0 : i32, i32
  }
  func.func @transform_15(%arg0: i32) -> (i32, i32, i32) {
    %c0_i32 = arith.constant 0 : i32
    %c0_i32_0 = arith.constant 0 : i32
    %c0_i32_1 = arith.constant 0 : i32
    return %arg0, %c0_i32, %c0_i32_0 : i32, i32, i32
  }
}

</mosaic_0001>

<bundles_post_ra>
// kernel: tpu_custom_call.1
= control target key start
LH: loop header
LB: loop body
LE: loop exit
PB: predicated region body
PF: predicated region fallthrough
CT: control target
= control target key end

     0   :  { %v4258_v1 = vmov 0.0   ;;  %vm4259_vm0 = vmmov 0   ;;  %vm80_vm1 = vcmask 261120   ;;  %s5232_s0 = inlined_call_operand.vmem [shape: f32[2,8,32], index: 0, kind: input, shape index: {}]   ;;  %s5233_s1 = inlined_call_operand.vmem [shape: bf16[32,32], index: 1, kind: input, shape index: {}]   ;;  %s5234_s2 = inlined_call_operand.vmem [shape: f32[1,32], index: 2, kind: input, shape index: {}]   ;;  %s5235_s3 = inlined_call_operand.vmem [shape: bf16[32,32], index: 3, kind: input, shape index: {}]   ;;  %s5236_s4 = inlined_call_operand.vmem [shape: f32[1,32], index: 4, kind: input, shape index: {}]   ;;  %s5237_s5 = inlined_call_operand.vmem [shape: bf16[32,32], index: 5, kind: input, shape index: {}]   ;;  %s5238_s6 = inlined_call_operand.vmem [shape: f32[1,32], index: 6, kind: input, shape index: {}]   ;;  %s5239_s7 = inlined_call_operand.vmem [shape: f32[32,32], index: 7, kind: input, shape index: {}]   ;;  %s5240_s8 = inlined_call_operand.vmem [shape: f32[1,32], index: 8, kind: input, shape index: {}]   ;;  %s5241_s9 = inlined_call_operand.vmem [shape: bf16[32,2048], index: 9, kind: input, shape index: {}]   ;;  %s5242_s10 = inlined_call_operand.vmem [shape: f32[1,2048], index: 10, kind: input, shape index: {}]   ;;  %s5243_s11 = inlined_call_operand.vmem [shape: bf16[2048,32], index: 11, kind: input, shape index: {}]   ;;  %s5244_s12 = inlined_call_operand.vmem [shape: f32[1,32], index: 12, kind: input, shape index: {}]   ;;  %s5245_s13 = inlined_call_operand.vmem [shape: f32[1,32], index: 13, kind: input, shape index: {}]   ;;  %s5246_s14 = inlined_call_operand.vmem [shape: f32[1,32], index: 14, kind: input, shape index: {}]   ;;  %s5247_s15 = inlined_call_operand.hbm [shape: f32[2,8,32], index: 15, kind: output, shape index: {}]  }
   0x1   :  { %v4056_v0 = vld [vmem:[%s5235_s3] sm:$0xff]   ;;  %3911 = vmatprep.subr.bf16.mxu1 %v4258_v1  ;;  %v4057_v2 = vld [vmem:[%s5235_s3 + $0x8] sm:$0xff]   ;;  %3903 = vmatprep.subr.bf16.mxu0 %v4258_v1 }
   0x2   :  { %3912 = vmatpush3.bf16.msra.mxu1 %v4056_v0  ;;  %v4058_v3 = vld [vmem:[%s5233_s1] sm:$0xff]   ;;  %3915 = vmatprep.mubr.msk.bf16.mxu1 %vm4259_vm0, %v4258_v1  ;;  %v53_v5 = vld [vmem:[%s5232_s0 + $0x8] sm:$0xff] }
   0x3   :  { %3913 = vmatprep.subr.bf16.mxu1 %v4258_v1  ;;  %v52_v4 = vld [vmem:[%s5232_s0] sm:$0xff]  ;;  %3907 = vmatprep.mubr.msk.bf16.mxu0 %vm4259_vm0, %v4258_v1  ;;  %v4059_v6 = vld [vmem:[%s5233_s1 + $0x8] sm:$0xff]  }
   0x4   :  { %3904 = vmatpush3.bf16.msra.mxu0 %v4058_v3  ;;  %v54_v7 = vpack.c.bf16 %v53_v5, %v52_v4  ;;  %v4060_v8 = vld [vmem:[%s5237_s5] sm:$0xff]   ;;  %v4061_v9 = vld [vmem:[%s5237_s5 + $0x8] sm:$0xff]  }
   0x5   :  { %3905 = vmatprep.subr.bf16.mxu0 %v4258_v1 }
   0x6   :  { %3914 = vmatpush3.bf16.msra.mxu1 %v4057_v2 }
   0x7   :  { %3927 = vmatprep.subr.bf16.mxu1 %v4258_v1 }
   0x8   :  { %3906 = vmatpush3.bf16.msra.mxu0 %v4059_v6 }
   0x9   :  { %3916 = vmatmul.mubr.msk.bf16.vlgmr.msra.gmra.mrb[0].mxu1 %vm80_vm1, %v54_v7  ;;  %3919 = vmatprep.subr.bf16.mxu0 %v4258_v1 }
   0xa   :  { %3929 = vmatprep.mubr.msk.bf16.mxu1 %vm4259_vm0, %v4258_v1 }
   0xb   :  { %3908 = vmatmul.mubr.msk.bf16.vlgmr.msra.gmra.mrb[0].mxu0 %vm80_vm1, %v54_v7 }
   0xc   :  { %3920 = vmatpush3.bf16.msra.mxu0 %v4060_v8  ;;  %3923 = vmatprep.mubr.msk.bf16.mxu0 %vm4259_vm0, %v4258_v1 }
   0xd   :  { %3921 = vmatprep.subr.bf16.mxu0 %v4258_v1 }
  0x10   :  { %3922 = vmatpush3.bf16.msra.mxu0 %v4061_v9 }
  0x11   :  { %3933 = vmatprep.subr.bf16.mxu0 %v4258_v1 }
  0x13   :  { %3924 = vmatmul.mubr.msk.bf16.vlgmr.msra.gmra.mrb[4].mxu0 %vm80_vm1, %v54_v7 }
  0x14   :  { %3935 = vmatprep.mubr.msk.bf16.mxu0 %vm4259_vm0, %v4258_v1 }
  0x15   :  { %20 = vsyncpa [#allocation3], 0  ;;  %v3478_v10 = vld [vmem:[%s5236_s4] ss:$0 sm:$0xff]  ;;  %vm263_vm2 = vcmask 64512   ;;  %s4260_s4 = smov 120  }
  0x16   :  { %v3474_v15 = vld [vmem:[%s5234_s2] ss:$0 sm:$0xff]  ;;  %vm383_vm3 = vcmask 1043456   ;;  %s4262_s25 = smov 104   ;;  %s4264_s1 = smov [#allocation2]  }
  0x17   :  { %v3482_v34 = vld [vmem:[%s5238_s6] ss:$0 sm:$0xff]  ;;  %s4261_s6 = smov 112  }
  0xdc   :  { %v182_v11 = vpop.f32.mrb[0].mxu1 }
  0xdd   :  { %v183_v12 = vadd.f32 %v3478_v10, %v182_v11  ;;  %v3917_v13 = vpop.f32.mrb[1].mxu1 }
  0xde   :  { %v185_v14 = vpop.f32.mrb[2].mxu1  ;;  %v118_v16 = vpop.f32.mrb[0].mxu0 }
  0xdf   :  { %v4398_v17 = vpack.c.bf16 %v183_v12, %v183_v12  ;;  %v186_v18 = vadd.f32 %v3478_v10, %v185_v14  ;;  %v3918_v19 = vpop.f32.mrb[3].mxu1  ;;  %v3909_v20 = vpop.f32.mrb[1].mxu0  ;;  %v119_v23 = vadd.f32 %v3474_v15, %v118_v16 }
  0xe0   :  { %v121_v21 = vpop.f32.mrb[2].mxu0 }
  0xe1   :  { %v4400_v22 = vpack.c.bf16 %v186_v18, %v186_v18  ;;  %v268_v24 = vsel %vm263_vm2, %v4398_v17, 0  ;;  %v3910_v25 = vpop.f32.mrb[3].mxu0  ;;  %v4409_v27 = vpack.c.bf16 %v119_v23, %v119_v23  ;;  %v122_v28 = vadd.f32 %v3474_v15, %v121_v21 }
  0xe2   :  { %3928 = vmatpush3.bf16.xpose.msra.mxu1 %v268_v24 }
  0xe3   :  { %531 = vrot.lane.b32.xlu1 %v4400_v22, %s4260_s4  ;;  %v314_v26 = vsel %vm263_vm2, %v4400_v22, 0  ;;  %3939 = vmatprep.subr.bf16.mxu1 %v4258_v1  ;;  %v4412_v32 = vpack.c.bf16 %v122_v28, %v122_v28 }
  0xe4   :  { %3934 = vmatpush3.bf16.xpose.msra.mxu0 %v314_v26 }
  0xe5   :  { %3945 = vmatprep.subr.bf16.mxu0 %v4258_v1 }
  0xe6   :  { %v246_v29 = vpop.f32.mrb[4].mxu0 }
  0xe7   :  { %v3925_v30 = vpop.f32.mrb[5].mxu0  ;;  %v247_v35 = vadd.f32 %v3482_v34, %v246_v29 }
  0xe8   :  { %v249_v31 = vpop.f32.mrb[6].mxu0 }
  0xe9   :  { %3930 = vmatmul.mubr.msk.bf16.vlgmr.msra.gmra.mrb[4].mxu1 %vm263_vm2, %v4409_v27  ;;  %v3926_v33 = vpop.f32.mrb[7].mxu0  ;;  %v250_v36 = vadd.f32 %v3482_v34, %v249_v31  ;;  %v4425_v37 = vpack.c.bf16 %v247_v35, %v247_v35 }
  0xea   :  { %3941 = vmatprep.mubr.msk.bf16.mxu1 %vm4259_vm0, %v4258_v1 }
  0xeb   :  { %3936 = vmatmul.mubr.msk.bf16.vlgmr.msra.gmra.mrb[8].mxu0 %vm263_vm2, %v4412_v32  ;;  %v4427_v38 = vpack.c.bf16 %v250_v36, %v250_v36  ;;  %v385_v39 = vsel %vm383_vm3, %v4425_v37, 0 }
  0xec   :  { %3947 = vmatprep.mubr.msk.bf16.mxu0 %vm4259_vm0, %v4258_v1  ;;  %3940 = vmatpush3.bf16.msra.mxu1 %v385_v39 }
  0xed   :  { %v431_v40 = vsel %vm383_vm3, %v4427_v38, 0  ;;  %3951 = vmatprep.subr.bf16.mxu1 %v4258_v1 }
  0xee   :  { %3946 = vmatpush3.bf16.msra.mxu0 %v431_v40 }
  0xef   :  { %3957 = vmatprep.subr.bf16.mxu0 %v4258_v1 }
 0x155   :  { %v532_v61 = vpop.permute.xlu1 %531 }
 0x156   :  { %v537_v9 = vsel %vm263_vm2, %v532_v61, 0 }
 0x1bc   :  { %v304_v41 = vpop.f32.mrb[4].mxu1 }
 0x1bd   :  { %v3931_v42 = vpop.f32.mrb[5].mxu1  ;;  %v356_v43 = vsel %vm263_vm2, %v304_v41, -inf }
 0x1be   :  { %357 = vmax.xlane.f32.xlu0 %v356_v43  ;;  %v307_v44 = vpop.f32.mrb[6].mxu1  ;;  %v350_v45 = vpop.f32.mrb[8].mxu0 }
 0x1bf   :  { %v3932_v46 = vpop.f32.mrb[7].mxu1  ;;  %v3937_v47 = vpop.f32.mrb[9].mxu0  ;;  %v359_v50 = vsel %vm263_vm2, %v350_v45, -inf }
 0x1c0   :  { %v353_v48 = vpop.f32.mrb[10].mxu0 }
 0x1c1   :  { %v3938_v49 = vpop.f32.mrb[11].mxu0 }
 0x1c2   :  { %360 = vmax.xlane.f32.xlu0 %v359_v50 }
 0x1d8   :  { %479 = vrot.lane.b32.xlu0 %v4398_v17, %s4260_s4 }
 0x24b   :  { %v358_v51 = vpop.xlane.xlu0 %357 }
 0x24c   :  { %v362_v52 = vsub.f32 %v304_v41, %v358_v51  ;;  %v260_v51 = vld [vmem:[%s5239_s7 + $0x8] sm:$0xff] }
 0x24e   :  { %v364_v53 = vmul.f32 1.442695, %v362_v52 }
 0x24f   :  { %v361_v54 = vpop.xlane.xlu0 %360 }
 0x250   :  { %4190 = vpow2.f32 %v364_v53  ;;  %v363_v55 = vsub.f32 %v350_v45, %v361_v54  ;;  %v702_v54 = vpack.c.bf16 %v260_v51, %v260_v51 }
 0x252   :  { %v366_v56 = vmul.f32 1.442695, %v363_v55 }
 0x253   :  { %v480_v3 = vpop.permute.xlu0 %479 }
 0x254   :  { %4192 = vpow2.f32 %v366_v56  ;;  %v485_v6 = vsel %vm263_vm2, %v480_v3, 0  ;;  %v259_v56 = vld [vmem:[%s5239_s7] sm:$0xff] }
 0x25a   :  { %v4191_v57 = vpop.eup %4190 }
 0x25b   :  { %v368_v58 = vsel %vm263_vm2, %v4191_v57, 0.0 }
 0x25c   :  { %369 = vadd.xlane.f32.xlu1 %v368_v58 }
 0x25e   :  { %v4193_v59 = vpop.eup %4192 }
 0x25f   :  { %v371_v60 = vsel %vm263_vm2, %v4193_v59, 0.0 }
 0x260   :  { %372 = vadd.xlane.f32.xlu1 %v371_v60  ;;  %v707_v60 = vsel %vm383_vm3, %v702_v54, 0 }
 0x271   :  { %476 = vrot.lane.b32.xlu1 %v4409_v27, %s4260_s4 }
 0x275   :  { %528 = vrot.lane.b32.xlu1 %v4412_v32, %s4260_s4 }
 0x2e9   :  { %v370_v62 = vpop.xlane.xlu1 %369 }
 0x2ea   :  { %4194 = vrcp.f32 %v370_v62 }
 0x2ed   :  { %v373_v63 = vpop.xlane.xlu1 %372 }
 0x2ee   :  { %4196 = vrcp.f32 %v373_v63 }
 0x2f1   :  { %v477_v10 = vpop.permute.xlu1 %476 }
 0x2f4   :  { %v4195_v0 = vpop.eup %4194 }
 0x2f5   :  { %v376_v2 = vmul.f32 %v4195_v0, %v4191_v57  ;;  %v529_v11 = vpop.permute.xlu1 %528 }
 0x2f7   :  { %v378_v4 = vpack.c.bf16 %v376_v2, %v376_v2 }
 0x2f8   :  { %v4197_v5 = vpop.eup %4196 }
 0x2f9   :  { %v377_v7 = vmul.f32 %v4197_v5, %v4193_v59  ;;  %3942 = vmatmul.mubr.msk.bf16.vlgmr.msra.gmra.mrb[8].mxu1 %vm263_vm2, %v378_v4  ;;  %v474_v59 = vpack.c.bf16 %v259_v56, %v259_v56 }
 0x2fa   :  { %3952 = vmatpush3.bf16.xpose.msra.mxu1 %v485_v6  ;;  %3953 = vmatprep.mubr.msk.bf16.mxu1 %vm4259_vm0, %v4258_v1 }
 0x2fb   :  { %v379_v8 = vpack.c.bf16 %v377_v7, %v377_v7  ;;  %3963 = vmatprep.subr.bf16.mxu1 %v4258_v1  ;;  %v754_v0 = vsel %vm383_vm3, %v474_v59, 0 }
 0x2fd   :  { %3948 = vmatmul.mubr.msk.bf16.vlgmr.msra.gmra.mrb[12].mxu0 %vm263_vm2, %v379_v8 }
 0x2fe   :  { %3958 = vmatpush3.bf16.xpose.msra.mxu0 %v537_v9  ;;  %3959 = vmatprep.mubr.msk.bf16.mxu0 %vm4259_vm0, %v4258_v1 }
 0x2ff   :  { %3969 = vmatprep.subr.bf16.mxu0 %v4258_v1 }
 0x301   :  { %3954 = vmatmul.mubr.msk.bf16.vlgmr.msra.gmra.mrb[12].mxu1 %vm263_vm2, %v477_v10 }
 0x302   :  { %3965 = vmatprep.mubr.msk.bf16.mxu1 %vm4259_vm0, %v4258_v1 }
 0x305   :  { %3960 = vmatmul.mubr.msk.bf16.vlgmr.msra.gmra.mrb[16].mxu0 %vm263_vm2, %v529_v11 }
 0x306   :  { %3971 = vmatprep.mubr.msk.bf16.mxu0 %vm4259_vm0, %v4258_v1 }
 0x3cc   :  { %v4461_v12 = vpop.f32.mrb[8].mxu1 }
 0x3cd   :  { %v3943_v13 = vpop.f32.mrb[9].mxu1 }
 0x3ce   :  { %v424_v14 = vpop.f32.mrb[10].mxu1 }
 0x3cf   :  { %v3944_v15 = vpop.f32.mrb[11].mxu1 }
 0x3d0   :  { %v4463_v16 = vpop.f32.mrb[12].mxu0 }
 0x3d1   :  { %v473_v18 = vpack.c.bf16 %v4463_v16, %v4461_v12  ;;  %v3949_v19 = vpop.f32.mrb[13].mxu0 }
 0x3d2   :  { %v470_v20 = vpop.f32.mrb[14].mxu0 }
 0x3d3   :  { %v3950_v21 = vpop.f32.mrb[15].mxu0 }
 0x3d4   :  { %v521_v23 = vpop.f32.mrb[12].mxu1 }
 0x3d5   :  { %v3955_v24 = vpop.f32.mrb[13].mxu1  ;;  %v579_v25 = vsel %vm263_vm2, %v521_v23, -inf }
 0x3d6   :  { %580 = vmax.xlane.f32.xlu0 %v579_v25  ;;  %v524_v26 = vpop.f32.mrb[14].mxu1 }
 0x3d7   :  { %v3956_v28 = vpop.f32.mrb[15].mxu1 }
 0x3d8   :  { %v573_v29 = vpop.f32.mrb[16].mxu0 }
 0x3d9   :  { %v3961_v30 = vpop.f32.mrb[17].mxu0  ;;  %v582_v31 = vsel %vm263_vm2, %v573_v29, -inf }
 0x3da   :  { %583 = vmax.xlane.f32.xlu1 %v582_v31  ;;  %v576_v33 = vpop.f32.mrb[18].mxu0 }
 0x3db   :  { %v3962_v34 = vpop.f32.mrb[19].mxu0 }
 0x3eb   :  { %653 = vrot.lane.b32.xlu1 %v4427_v38, %s4260_s4 }
 0x3ef   :  { %799 = vrot.lane.b32.xlu1 %v4398_v17, %s4261_s6 }
 0x3f3   :  { %849 = vrot.lane.b32.xlu1 %v4400_v22, %s4261_s6 }
 0x3f7   :  { %847 = vrot.lane.b32.xlu1 %v4412_v32, %s4261_s6 }
 0x463   :  { %v581_v35 = vpop.xlane.xlu0 %580 }
 0x464   :  { %v585_v36 = vsub.f32 %v521_v23, %v581_v35 }
 0x466   :  { %v587_v39 = vmul.f32 1.442695, %v585_v36 }
 0x467   :  { %v584_v40 = vpop.xlane.xlu1 %583 }
 0x468   :  { %4198 = vpow2.f32 %v587_v39  ;;  %v586_v41 = vsub.f32 %v573_v29, %v584_v40 }
 0x46a   :  { %v589_v42 = vmul.f32 1.442695, %v586_v41 }
 0x46b   :  { %v654_v43 = vpop.permute.xlu1 %653 }
 0x46c   :  { %4200 = vpow2.f32 %v589_v42  ;;  %v659_v44 = vsel %vm383_vm3, %v654_v43, 0 }
 0x46d   :  { %3970 = vmatpush3.bf16.msra.mxu0 %v659_v44 }
 0x46e   :  { %3981 = vmatprep.subr.bf16.mxu0 %v4258_v1 }
 0x46f   :  { %v800_v2 = vpop.permute.xlu1 %799 }
 0x470   :  { %v805_v14 = vsel %vm263_vm2, %v800_v2, 0 }
 0x472   :  { %v4199_v45 = vpop.eup %4198 }
 0x473   :  { %v591_v46 = vsel %vm263_vm2, %v4199_v45, 0.0  ;;  %v850_v3 = vpop.permute.xlu1 %849 }
 0x474   :  { %592 = vadd.xlane.f32.xlu0 %v591_v46  ;;  %v855_v4 = vsel %vm263_vm2, %v850_v3, 0 }
 0x476   :  { %v4201_v47 = vpop.eup %4200 }
 0x477   :  { %v594_v48 = vsel %vm263_vm2, %v4201_v47, 0.0  ;;  %v848_v5 = vpop.permute.xlu1 %847 }
 0x478   :  { %595 = vadd.xlane.f32.xlu0 %v594_v48 }
 0x48e   :  { %604 = vrot.lane.b32.xlu0 %v4425_v37, %s4260_s4 }
 0x492   :  { %797 = vrot.lane.b32.xlu0 %v4409_v27, %s4261_s6 }
 0x501   :  { %v593_v49 = vpop.xlane.xlu0 %592 }
 0x502   :  { %4202 = vrcp.f32 %v593_v49 }
 0x505   :  { %v596_v50 = vpop.xlane.xlu0 %595 }
 0x506   :  { %4204 = vrcp.f32 %v596_v50 }
 0x509   :  { %v605_v52 = vpop.permute.xlu0 %604 }
 0x50a   :  { %v610_v53 = vsel %vm383_vm3, %v605_v52, 0 }
 0x50b   :  { %3964 = vmatpush3.bf16.msra.mxu1 %v610_v53 }
 0x50c   :  { %v4203_v55 = vpop.eup %4202  ;;  %3975 = vmatprep.subr.bf16.mxu1 %v4258_v1 }
 0x50d   :  { %v599_v57 = vmul.f32 %v4203_v55, %v4199_v45  ;;  %v798_v19 = vpop.permute.xlu0 %797 }
 0x50f   :  { %v601_v58 = vpack.c.bf16 %v599_v57, %v599_v57 }
 0x510   :  { %v4205_v61 = vpop.eup %4204 }
 0x511   :  { %v600_v62 = vmul.f32 %v4205_v61, %v4201_v47  ;;  %3966 = vmatmul.mubr.msk.bf16.vlgmr.msra.gmra.mrb[16].mxu1 %vm263_vm2, %v601_v58 }
 0x512   :  { %3976 = vmatpush3.bf16.msra.mxu1 %v707_v60  ;;  %3977 = vmatprep.mubr.msk.bf16.mxu1 %vm4259_vm0, %v4258_v1 }
 0x513   :  { %v602_v63 = vpack.c.bf16 %v600_v62, %v600_v62  ;;  %3987 = vmatprep.subr.bf16.mxu1 %v4258_v1 }
 0x515   :  { %3972 = vmatmul.mubr.msk.bf16.vlgmr.msra.gmra.mrb[20].mxu0 %vm263_vm2, %v602_v63 }
 0x516   :  { %3982 = vmatpush3.bf16.msra.mxu0 %v754_v0  ;;  %3983 = vmatprep.mubr.msk.bf16.mxu0 %vm4259_vm0, %v4258_v1 }
 0x517   :  { %3993 = vmatprep.subr.bf16.mxu0 %v4258_v1 }
 0x51d   :  { %3984 = vmatmul.mubr.msk.bf16.vlgmr.msra.gmra.mrb[24].mxu0 %vm263_vm2, %v473_v18 }
 0x51e   :  { %3995 = vmatprep.mubr.msk.bf16.mxu0 %vm4259_vm0, %v4258_v1 }
 0x51f   :  { %3994 = vmatpush3.bf16.xpose.msra.mxu0 %v855_v4 }
 0x520   :  { %4005 = vmatprep.subr.bf16.mxu0 %v4258_v1 }
 0x526   :  { %3996 = vmatmul.mubr.msk.bf16.vlgmr.msra.gmra.mrb[28].mxu0 %vm263_vm2, %v848_v5  ;;  %v261_v5 = vld [vmem:[%s5239_s7 + $0x10] sm:$0xff] }
 0x527   :  { %4007 = vmatprep.mubr.msk.bf16.mxu0 %vm4259_vm0, %v4258_v1 }
 0x5e4   :  { %v646_v6 = vpop.f32.mrb[16].mxu1 }
 0x5e5   :  { %v3967_v7 = vpop.f32.mrb[17].mxu1 }
 0x5e6   :  { %v649_v8 = vpop.f32.mrb[18].mxu1 }
 0x5e7   :  { %v3968_v9 = vpop.f32.mrb[19].mxu1 }
 0x5e8   :  { %v695_v10 = vpop.f32.mrb[20].mxu0 }
 0x5e9   :  { %v701_v11 = vpack.c.bf16 %v695_v10, %v646_v6  ;;  %v3973_v12 = vpop.f32.mrb[21].mxu0  ;;  %v1018_v6 = vpack.c.bf16 %v261_v5, %v261_v5 }
 0x5ea   :  { %v698_v13 = vpop.f32.mrb[22].mxu0 }
 0x5eb   :  { %v3974_v15 = vpop.f32.mrb[23].mxu0  ;;  %3978 = vmatmul.mubr.msk.bf16.vlgmr.msra.gmra.mrb[20].mxu1 %vm263_vm2, %v701_v11  ;;  %v1023_v7 = vsel %vm383_vm3, %v1018_v6, 0 }
 0x5ec   :  { %3988 = vmatpush3.bf16.xpose.msra.mxu1 %v805_v14  ;;  %3989 = vmatprep.mubr.msk.bf16.mxu1 %vm4259_vm0, %v4258_v1 }
 0x5ed   :  { %3999 = vmatprep.subr.bf16.mxu1 %v4258_v1 }
 0x5f0   :  { %v790_v16 = vpop.f32.mrb[24].mxu0 }
 0x5f1   :  { %v3985_v18 = vpop.f32.mrb[25].mxu0 }
 0x5f2   :  { %v793_v20 = vpop.f32.mrb[26].mxu0 }
 0x5f3   :  { %v3986_v21 = vpop.f32.mrb[27].mxu0  ;;  %3990 = vmatmul.mubr.msk.bf16.vlgmr.msra.gmra.mrb[24].mxu1 %vm263_vm2, %v798_v19 }
 0x5f4   :  { %4001 = vmatprep.mubr.msk.bf16.mxu1 %vm4259_vm0, %v4258_v1 }
 0x5f9   :  { %v891_v23 = vpop.f32.mrb[28].mxu0 }
 0x5fa   :  { %v3997_v24 = vpop.f32.mrb[29].mxu0  ;;  %v900_v25 = vsel %vm263_vm2, %v891_v23, -inf }
 0x5fb   :  { %901 = vmax.xlane.f32.xlu1 %v900_v25  ;;  %v894_v26 = vpop.f32.mrb[30].mxu0 }
 0x5fc   :  { %v3998_v28 = vpop.f32.mrb[31].mxu0 }
 0x60c   :  { %969 = vrot.lane.b32.xlu1 %v4427_v38, %s4261_s6 }
 0x610   :  { %1070 = vrot.lane.b32.xlu1 %v4398_v17, %s4262_s25 }
 0x614   :  { %1120 = vrot.lane.b32.xlu1 %v4400_v22, %s4262_s25 }
 0x618   :  { %1118 = vrot.lane.b32.xlu1 %v4412_v32, %s4262_s25 }
 0x688   :  { %v902_v29 = vpop.xlane.xlu1 %901 }
 0x689   :  { %v904_v33 = vsub.f32 %v891_v23, %v902_v29 }
 0x68b   :  { %v907_v34 = vmul.f32 1.442695, %v904_v33 }
 0x68c   :  { %v970_v30 = vpop.permute.xlu1 %969 }
 0x68d   :  { %v975_v31 = vsel %vm383_vm3, %v970_v30, 0  ;;  %4206 = vpow2.f32 %v907_v34 }
 0x68e   :  { %4006 = vmatpush3.bf16.msra.mxu0 %v975_v31 }
 0x68f   :  { %4017 = vmatprep.subr.bf16.mxu0 %v4258_v1 }
 0x690   :  { %v1071_v55 = vpop.permute.xlu1 %1070 }
 0x691   :  { %v1076_v57 = vsel %vm263_vm2, %v1071_v55, 0  ;;  %v262_v55 = vld [vmem:[%s5239_s7 + $0x18] sm:$0xff] }
 0x694   :  { %v1121_v13 = vpop.permute.xlu1 %1120 }
 0x695   :  { %v1126_v19 = vsel %vm263_vm2, %v1121_v13, 0 }
 0x697   :  { %v4207_v43 = vpop.eup %4206 }
 0x698   :  { %v912_v46 = vsel %vm263_vm2, %v4207_v43, 0.0  ;;  %v1119_v21 = vpop.permute.xlu1 %1118 }
 0x6be   :  { %v743_v35 = vpop.f32.mrb[20].mxu1 }
 0x6bf   :  { %v4533_v36 = vadd.f32 %v790_v16, %v743_v35  ;;  %v3979_v17 = vpop.f32.mrb[21].mxu1 }
 0x6c0   :  { %v746_v39 = vpop.f32.mrb[22].mxu1 }
 0x6c1   :  { %v4535_v40 = vadd.f32 %v793_v20, %v746_v39  ;;  %v3980_v22 = vpop.f32.mrb[23].mxu1 }
 0x6c6   :  { %v841_v41 = vpop.f32.mrb[24].mxu1 }
 0x6c7   :  { %v3991_v32 = vpop.f32.mrb[25].mxu1  ;;  %v897_v42 = vsel %vm263_vm2, %v841_v41, -inf }
 0x6c8   :  { %898 = vmax.xlane.f32.xlu0 %v897_v42  ;;  %v844_v44 = vpop.f32.mrb[26].mxu1 }
 0x6c9   :  { %v3992_v45 = vpop.f32.mrb[27].mxu1 }
 0x6cc   :  { %913 = vadd.xlane.f32.xlu0 %v912_v46 }
 0x755   :  { %v899_v47 = vpop.xlane.xlu0 %898 }
 0x756   :  { %v903_v48 = vsub.f32 %v841_v41, %v899_v47 }
 0x758   :  { %v905_v49 = vmul.f32 1.442695, %v903_v48 }
 0x759   :  { %v914_v50 = vpop.xlane.xlu0 %913 }
 0x75a   :  { %4208 = vpow2.f32 %v905_v49 }
 0x75b   :  { %4210 = vrcp.f32 %v914_v50 }
 0x764   :  { %v4209_v51 = vpop.eup %4208 }
 0x765   :  { %v4211_v52 = vpop.eup %4210  ;;  %v909_v53 = vsel %vm263_vm2, %v4209_v51, 0.0 }
 0x766   :  { %v918_v54 = vmul.f32 %v4211_v52, %v4207_v43  ;;  %910 = vadd.xlane.f32.xlu0 %v909_v53 }
 0x768   :  { %v920_v56 = vpack.c.bf16 %v918_v54, %v918_v54 }
 0x76a   :  { %4008 = vmatmul.mubr.msk.bf16.vlgmr.msra.gmra.mrb[32].mxu0 %vm263_vm2, %v920_v56  ;;  %v1289_v56 = vpack.c.bf16 %v262_v55, %v262_v55 }
 0x76b   :  { %4018 = vmatpush3.bf16.xpose.msra.mxu0 %v1076_v57  ;;  %4019 = vmatprep.mubr.msk.bf16.mxu0 %vm4259_vm0, %v4258_v1 }
 0x76c   :  { %4029 = vmatprep.subr.bf16.mxu0 %v4258_v1  ;;  %v1294_v57 = vsel %vm383_vm3, %v1289_v56, 0 }
 0x77c   :  { %921 = vrot.lane.b32.xlu0 %v4425_v37, %s4261_s6 }
 0x780   :  { %1068 = vrot.lane.b32.xlu0 %v4409_v27, %s4262_s25 }
 0x7f3   :  { %v911_v58 = vpop.xlane.xlu0 %910 }
 0x7f4   :  { %4212 = vrcp.f32 %v911_v58 }
 0x7f7   :  { %v922_v59 = vpop.permute.xlu0 %921 }
 0x7f8   :  { %v927_v60 = vsel %vm383_vm3, %v922_v59, 0 }
 0x7f9   :  { %4000 = vmatpush3.bf16.msra.mxu1 %v927_v60 }
 0x7fa   :  { %4011 = vmatprep.subr.bf16.mxu1 %v4258_v1 }
 0x7fb   :  { %v1069_v61 = vpop.permute.xlu0 %1068 }
 0x7fc   :  { %4020 = vmatmul.mubr.msk.bf16.vlgmr.msra.gmra.mrb[36].mxu0 %vm263_vm2, %v1069_v61 }
 0x7fd   :  { %4031 = vmatprep.mubr.msk.bf16.mxu0 %vm4259_vm0, %v4258_v1 }
 0x7fe   :  { %v4213_v62 = vpop.eup %4212 }
 0x7ff   :  { %v917_v63 = vmul.f32 %v4213_v62, %v4209_v51 }
 0x801   :  { %v919_v0 = vpack.c.bf16 %v917_v63, %v917_v63 }
 0x803   :  { %4002 = vmatmul.mubr.msk.bf16.vlgmr.msra.gmra.mrb[28].mxu1 %vm263_vm2, %v919_v0 }
 0x804   :  { %4013 = vmatprep.mubr.msk.bf16.mxu1 %vm4259_vm0, %v4258_v1  ;;  %4012 = vmatpush3.bf16.msra.mxu1 %v1023_v7 }
 0x805   :  { %4023 = vmatprep.subr.bf16.mxu1 %v4258_v1 }
 0x83d   :  { %v1011_v27 = vpop.f32.mrb[32].mxu0 }
 0x83e   :  { %v4009_v2 = vpop.f32.mrb[33].mxu0 }
 0x83f   :  { %v1014_v3 = vpop.f32.mrb[34].mxu0 }
 0x840   :  { %v4010_v4 = vpop.f32.mrb[35].mxu0  ;;  %v3506_v3 = vld [vmem:[%s5240_s8] ss:$0 sm:$0xff] }
 0x8cf   :  { %v1112_v8 = vpop.f32.mrb[36].mxu0 }
 0x8d0   :  { %v4021_v9 = vpop.f32.mrb[37].mxu0  ;;  %v1168_v10 = vsel %vm263_vm2, %v1112_v8, -inf }
 0x8d1   :  { %1169 = vmax.xlane.f32.xlu0 %v1168_v10  ;;  %v1115_v11 = vpop.f32.mrb[38].mxu0 }
 0x8d2   :  { %v4022_v12 = vpop.f32.mrb[39].mxu0  ;;  %v4230_v11 = vld [vmem:[%s5232_s0] sm:$0xff] }
 0x8d6   :  { %v963_v14 = vpop.f32.mrb[28].mxu1 }
 0x8d7   :  { %v1017_v15 = vpack.c.bf16 %v1011_v27, %v963_v14  ;;  %v4003_v16 = vpop.f32.mrb[29].mxu1  ;;  %v4231_v14 = vld [vmem:[%s5232_s0 + $0x8] sm:$0xff]  ;;  %s3463_s0 = sshll.u32 %s4264_s1, 4  ;;  %s3464_s0 = int_to_ptr.vmem [resolvable:$true] %s3463_s0 }
 0x8d8   :  { %v966_v18 = vpop.f32.mrb[30].mxu1  ;;  %s4234_s18 = scalar_lea.vmem %s3464_s0, 256  ;;  %p4239_p1 = scmp.lt.s32.totalorder %s3464_s0, %s3464_s0 }
 0x8d9   :  { %v4004_v20 = vpop.f32.mrb[31].mxu1  ;;  %4014 = vmatmul.mubr.msk.bf16.vlgmr.msra.gmra.mrb[32].mxu1 %vm263_vm2, %v1017_v15  ;;  %p4235_p0 = scmp.ne.s32.totalorder %s3464_s0, %s4234_s18  ;;  %p4240_p2 = scmp.lt.s32.totalorder %s4234_s18, %s4234_s18 }
 0x8da   :  { %4024 = vmatpush3.bf16.xpose.msra.mxu1 %v1126_v19  ;;  %4025 = vmatprep.mubr.msk.bf16.mxu1 %vm4259_vm0, %v4258_v1 }
 0x8db   :  { %4035 = vmatprep.subr.bf16.mxu1 %v4258_v1  ;;  %p4241_p3 = por %p4240_p2, %p4239_p1 }
 0x8dd   :  { %p4242_p4 = pnand %p4241_p3, %p4235_p0 }
 0x8e1   :  { %4026 = vmatmul.mubr.msk.bf16.vlgmr.msra.gmra.mrb[36].mxu1 %vm263_vm2, %v1119_v21 }
 0x8e2   :  { %4037 = vmatprep.mubr.msk.bf16.mxu1 %vm4259_vm0, %v4258_v1 }
 0x95e   :  { %v1170_v23 = vpop.xlane.xlu0 %1169 }
 0x95f   :  { %v1174_v24 = vsub.f32 %v1112_v8, %v1170_v23 }
 0x961   :  { %v1176_v25 = vmul.f32 1.442695, %v1174_v24 }
 0x963   :  { %4214 = vpow2.f32 %v1176_v25 }
 0x96d   :  { %v4215_v26 = vpop.eup %4214 }
 0x96e   :  { %v1180_v28 = vsel %vm263_vm2, %v4215_v26, 0.0 }
 0x96f   :  { %1181 = vadd.xlane.f32.xlu0 %v1180_v28 }
 0x9ac   :  { %v1059_v29 = vpop.f32.mrb[32].mxu1 }
 0x9ad   :  { %v1066_v30 = vadd.f32 %v1059_v29, %v4533_v36  ;;  %v4015_v31 = vpop.f32.mrb[33].mxu1 }
 0x9ae   :  { %v1062_v33 = vpop.f32.mrb[34].mxu1  ;;  %v1402_v31 = vld [vmem:[%s5241_s9 + $0x40] sm:$0xff] }
 0x9af   :  { %v1067_v34 = vadd.f32 %v1062_v33, %v4535_v40  ;;  %v4016_v35 = vpop.f32.mrb[35].mxu1  ;;  %v1395_v33 = vld [vmem:[%s5241_s9 + $0x8] sm:$0xff] }
 0x9b0   :  { %v1403_v35 = vld [vmem:[%s5241_s9 + $0x48] sm:$0xff] }
 0x9b4   :  { %v1162_v17 = vpop.f32.mrb[36].mxu1 }
 0x9b5   :  { %v4027_v39 = vpop.f32.mrb[37].mxu1  ;;  %v1171_v22 = vsel %vm263_vm2, %v1162_v17, -inf }
 0x9b6   :  { %1172 = vmax.xlane.f32.xlu1 %v1171_v22  ;;  %v1165_v41 = vpop.f32.mrb[38].mxu1  ;;  %v3511_v39 = vcombine.low %v1395_v33, %v1403_v35  ;;  %v3512_v22 = vcombine.high %v1395_v33, %v1403_v35  ;;  %v1401_v33 = vld [vmem:[%s5241_s9 + $0x38] sm:$0xff] }
 0x9b7   :  { %v4028_v32 = vpop.f32.mrb[39].mxu1  ;;  %v1410_v41 = vld [vmem:[%s5241_s9 + $0x80] sm:$0xff] }
 0x9b8   :  { %v1418_v32 = vld [vmem:[%s5241_s9 + $0xc0] sm:$0xff] }
 0x9c7   :  { %1240 = vrot.lane.b32.xlu1 %v4427_v38, %s4262_s25 }
 0x9fc   :  { %v1182_v47 = vpop.xlane.xlu0 %1181 }
 0xa43   :  { %v1173_v42 = vpop.xlane.xlu1 %1172 }
 0xa44   :  { %v1175_v43 = vsub.f32 %v1162_v17, %v1173_v42  ;;  %v1411_v42 = vld [vmem:[%s5241_s9 + $0x88] sm:$0xff] }
 0xa46   :  { %v1178_v44 = vmul.f32 1.442695, %v1175_v43  ;;  %v3526_v43 = vcombine.high %v1410_v41, %v1418_v32 }
 0xa47   :  { %v1241_v45 = vpop.permute.xlu1 %1240 }
 0xa48   :  { %4216 = vpow2.f32 %v1178_v44  ;;  %v1246_v36 = vsel %vm383_vm3, %v1241_v45, 0  ;;  %v1419_v44 = vld [vmem:[%s5241_s9 + $0xc8] sm:$0xff]  ;;  %v3525_v45 = vcombine.low %v1410_v41, %v1418_v32  ;;  %v1416_v41 = vld [vmem:[%s5241_s9 + $0xb0] sm:$0xff] }
 0xa49   :  { %4036 = vmatpush3.bf16.msra.mxu1 %v1246_v36  ;;  %4218 = vrcp.f32 %v1182_v47  ;;  %v3527_v36 = vcombine.low %v1411_v42, %v1419_v44  ;;  %v1404_v47 = vld [vmem:[%s5241_s9 + $0x50] sm:$0xff] }
 0xa4a   :  { %v1424_v32 = vld [vmem:[%s5241_s9 + $0xf0] sm:$0xff] }
 0xa52   :  { %v4217_v40 = vpop.eup %4216 }
 0xa53   :  { %v1183_v46 = vsel %vm263_vm2, %v4217_v40, 0.0  ;;  %v4219_v48 = vpop.eup %4218 }
 0xa54   :  { %1184 = vadd.xlane.f32.xlu0 %v1183_v46  ;;  %v1188_v38 = vmul.f32 %v4219_v48, %v4215_v26  ;;  %v1396_v46 = vld [vmem:[%s5241_s9 + $0x10] sm:$0xff]  ;;  %v1397_v48 = vld [vmem:[%s5241_s9 + $0x18] sm:$0xff] }
 0xa56   :  { %v1190_v52 = vpack.c.bf16 %v1188_v38, %v1188_v38  ;;  %v3513_v38 = vcombine.low %v1396_v46, %v1404_v47 }
 0xa6a   :  { %1192 = vrot.lane.b32.xlu0 %v4425_v37, %s4262_s25 }
 0xae1   :  { %v1185_v49 = vpop.xlane.xlu0 %1184 }
 0xae2   :  { %4220 = vrcp.f32 %v1185_v49  ;;  %v4263_v49 = vmov 0  }
 0xae5   :  { %v1193_v50 = vpop.permute.xlu0 %1192 }
 0xae6   :  { %v1198_v51 = vsel %vm383_vm3, %v1193_v50, 0  ;;  %v3514_v50 = vcombine.high %v1396_v46, %v1404_v47  ;;  %v3537_v46 = vcombine.low %v1416_v41, %v1424_v32 }
 0xae7   :  { %4030 = vmatpush3.bf16.msra.mxu0 %v1198_v51  ;;  %v1405_v51 = vld [vmem:[%s5241_s9 + $0x58] sm:$0xff] }
 0xae8   :  { %4041 = vmatprep.subr.bf16.mxu0 %v4258_v1 }
 0xaea   :  { %4032 = vmatmul.mubr.msk.bf16.vlgmr.msra.gmra.mrb[40].mxu0 %vm263_vm2, %v1190_v52  ;;  %v3515_v52 = vcombine.low %v1397_v48, %v1405_v51 }
 0xaeb   :  { %4043 = vmatprep.mubr.msk.bf16.mxu0 %vm4259_vm0, %v4258_v1  ;;  %4042 = vmatpush3.bf16.msra.mxu0 %v1294_v57 }
 0xaec   :  { %v4221_v53 = vpop.eup %4220  ;;  %1716 = vmatprep.subr.bf16.mxu0 %v3512_v22 }
 0xaed   :  { %v1189_v37 = vmul.f32 %v4221_v53, %v4217_v40  ;;  %v3528_v40 = vcombine.high %v1411_v42, %v1419_v44  ;;  %v3516_v53 = vcombine.high %v1397_v48, %v1405_v51  ;;  %v1417_v42 = vld [vmem:[%s5241_s9 + $0xb8] sm:$0xff]  ;;  %v4062_v48 = vld [vmem:[%s5243_s11 + $0x40] sm:$0xff]  }
 0xaee   :  { %v4065_v51 = vld [vmem:[%s5243_s11 + $0x80] sm:$0xff]  }
 0xaef   :  { %v1191_v54 = vpack.c.bf16 %v1189_v37, %v1189_v37 }
 0xaf1   :  { %4038 = vmatmul.mubr.msk.bf16.vlgmr.msra.gmra.mrb[40].mxu1 %vm263_vm2, %v1191_v54 }
 0xaf2   :  { %1705 = vmatprep.mubr.bf16.mxu1 %v4263_v49 }
 0xbbd   :  { %v1234_v58 = vpop.f32.mrb[40].mxu0 }
 0xbbe   :  { %v4033_v59 = vpop.f32.mrb[41].mxu0 }
 0xbbf   :  { %v1237_v60 = vpop.f32.mrb[42].mxu0 }
 0xbc0   :  { %v4034_v61 = vpop.f32.mrb[43].mxu0  ;;  %v3507_v60 = vld [vmem:[%s5245_s13] ss:$0 sm:$0xff] }
 0xbc4   :  { %v1282_v62 = vpop.f32.mrb[40].mxu1 }
 0xbc5   :  { %v1288_v63 = vpack.c.bf16 %v1282_v62, %v1234_v58  ;;  %v4039_v1 = vpop.f32.mrb[41].mxu1 }
 0xbc6   :  { %v1285_v0 = vpop.f32.mrb[42].mxu1 }
 0xbc7   :  { %v4040_v27 = vpop.f32.mrb[43].mxu1  ;;  %4044 = vmatmul.mubr.msk.bf16.vlgmr.msra.gmra.mrb[44].mxu0 %vm263_vm2, %v1288_v63  ;;  %v3508_v0 = vld [vmem:[%s5246_s14] ss:$0 sm:$0xff] }
 0xbc8   :  { %1717 = vmatpush1.bf16.msra.mxu0 %v3511_v39  ;;  %1748 = vmatprep.mubr.bf16.mxu0 %v4263_v49 }
 0xbc9   :  { %1718 = vmatprep.subr.bf16.mxu0 %v3528_v40 }
 0xbcc   :  { %1719 = vmatpush1.bf16.msra.mxu0 %v3527_v36  ;;  %v3538_v36 = vcombine.high %v1416_v41, %v1424_v32 }
 0xbcd   :  { %1802 = vmatprep.subr.bf16.mxu0 %v3516_v53  ;;  %v4068_v53 = vld [vmem:[%s5243_s11 + $0x8] sm:$0xff]  }
 0xc9a   :  { %v1330_v2 = vpop.f32.mrb[44].mxu0 }
 0xc9b   :  { %v1337_v4 = vadd.f32 %v1330_v2, %v1066_v30  ;;  %v4045_v5 = vpop.f32.mrb[45].mxu0  ;;  %v1394_v30 = vld [vmem:[%s5241_s9] sm:$0xff]  ;;  %v1412_v2 = vld [vmem:[%s5241_s9 + $0x90] sm:$0xff] }
 0xc9c   :  { %v1333_v6 = vpop.f32.mrb[46].mxu0  ;;  %v3509_v17 = vcombine.low %v1394_v30, %v1402_v31  ;;  %v1421_v5 = vld [vmem:[%s5241_s9 + $0xd8] sm:$0xff] }
 0xc9d   :  { %v1346_v7 = vadd.f32 %v3506_v3, %v1337_v4  ;;  %v1338_v8 = vadd.f32 %v1333_v6, %v1067_v34  ;;  %v4046_v9 = vpop.f32.mrb[47].mxu0  ;;  %v3510_v34 = vcombine.high %v1394_v30, %v1402_v31  ;;  %v1413_v4 = vld [vmem:[%s5241_s9 + $0x98] sm:$0xff]  ;;  %v1400_v30 = vld [vmem:[%s5241_s9 + $0x30] sm:$0xff] }
 0xc9e   :  { %v1408_v31 = vld [vmem:[%s5241_s9 + $0x70] sm:$0xff] }
 0xc9f   :  { %v1347_v10 = vadd.f32 %v3506_v3, %v1338_v8  ;;  %v1348_v12 = vadd.f32 %v4230_v11, %v1346_v7  ;;  %1673 = vmatprep.subr.bf16.mxu1 %v3510_v34  ;;  %v1420_v3 = vld [vmem:[%s5241_s9 + $0xd0] sm:$0xff]  ;;  %v1398_v11 = vld [vmem:[%s5241_s9 + $0x20] sm:$0xff]  ;;  %v1409_v34 = vld [vmem:[%s5241_s9 + $0x78] sm:$0xff]  ;;  %v3522_v39 = vcombine.high %v1400_v30, %v1408_v31  ;;  %v3521_v44 = vcombine.low %v1400_v30, %v1408_v31 }
 0xca0   :  { %1674 = vmatpush1.bf16.msra.mxu1 %v3509_v17  ;;  %v3530_v9 = vcombine.high %v1412_v2, %v1420_v3  ;;  %v3524_v22 = vcombine.high %v1401_v33, %v1409_v34 }
 0xca1   :  { %v1350_v13 = vsel %vm80_vm1, %v1348_v12, 0.0  ;;  %v1349_v15 = vadd.f32 %v4231_v14, %v1347_v10  ;;  %1675 = vmatprep.subr.bf16.mxu1 %v3526_v43  ;;  %v3532_v10 = vcombine.high %v1413_v4, %v1421_v5  ;;  %v1407_v14 = vld [vmem:[%s5241_s9 + $0x68] sm:$0xff]  ;;  %v1425_v43 = vld [vmem:[%s5241_s9 + $0xf8] sm:$0xff] }
 0xca2   :  { %1351 = vadd.xlane.f32.xlu1 %v1350_v13  ;;  %v1399_v13 = vld [vmem:[%s5241_s9 + $0x28] sm:$0xff]  ;;  %v3540_v40 = vcombine.high %v1417_v42, %v1425_v43  ;;  %v3539_v47 = vcombine.low %v1417_v42, %v1425_v43 }
 0xca3   :  { %v1353_v16 = vsel %vm80_vm1, %v1349_v15, 0.0 }
 0xca4   :  { %1354 = vadd.xlane.f32.xlu0 %v1353_v16  ;;  %1676 = vmatpush1.bf16.msra.mxu1 %v3525_v45  ;;  %v3531_v16 = vcombine.low %v1413_v4, %v1421_v5  ;;  %v3523_v45 = vcombine.low %v1401_v33, %v1409_v34  ;;  %v4085_v4 = vld [vmem:[%s5243_s11 + $0xa8] sm:$0xff]   ;;  %v4086_v5 = vld [vmem:[%s5243_s11 + $0x70] sm:$0xff]  }
 0xca5   :  { %1759 = vmatprep.subr.bf16.mxu1 %v3514_v50  ;;  %v4064_v50 = vld [vmem:[%s5243_s11] sm:$0xff]  }
 0xd2f   :  { %v1352_v18 = vpop.xlane.xlu1 %1351 }
 0xd30   :  { %v1357_v19 = vmul.f32 0.03125, %v1352_v18 }
 0xd31   :  { %v1355_v20 = vpop.xlane.xlu0 %1354 }
 0xd32   :  { %v1359_v21 = vsub.f32 %v1348_v12, %v1357_v19  ;;  %v1358_v23 = vmul.f32 0.03125, %v1355_v20  ;;  %v1406_v12 = vld [vmem:[%s5241_s9 + $0x60] sm:$0xff]  ;;  %v3520_v19 = vcombine.high %v1399_v13, %v1407_v14 }
 0xd33   :  { %v3518_v18 = vcombine.high %v1398_v11, %v1406_v12  ;;  %v1414_v20 = vld [vmem:[%s5241_s9 + $0xa0] sm:$0xff] }
 0xd34   :  { %v1360_v24 = vsub.f32 %v1349_v15, %v1358_v23  ;;  %v1361_v25 = vmul.f32 %v1359_v21, %v1359_v21  ;;  %v3529_v15 = vcombine.low %v1412_v2, %v1420_v3  ;;  %v1415_v23 = vld [vmem:[%s5241_s9 + $0xa8] sm:$0xff] }
 0xd35   :  { %v4083_v2 = vld [vmem:[%s5243_s11 + $0xe8] sm:$0xff]  }
 0xd36   :  { %v1363_v26 = vsel %vm80_vm1, %v1361_v25, 0.0  ;;  %v1362_v28 = vmul.f32 %v1360_v24, %v1360_v24  ;;  %v3517_v25 = vcombine.low %v1398_v11, %v1406_v12  ;;  %v4084_v3 = vld [vmem:[%s5243_s11 + $0x28] sm:$0xff]   ;;  %v4090_v11 = vld [vmem:[%s5243_s11 + $0x78] sm:$0xff]  }
 0xd37   :  { %1364 = vadd.xlane.f32.xlu0 %v1363_v26  ;;  %v3519_v26 = vcombine.low %v1399_v13, %v1407_v14  ;;  %v4091_v12 = vld [vmem:[%s5243_s11 + $0xf8] sm:$0xff]  }
 0xd38   :  { %v1366_v29 = vsel %vm80_vm1, %v1362_v28, 0.0  ;;  %v4092_v13 = vld [vmem:[%s5243_s11 + $0x38] sm:$0xff]  }
 0xd39   :  { %1367 = vadd.xlane.f32.xlu1 %v1366_v29  ;;  %v4093_v14 = vld [vmem:[%s5243_s11 + $0xb8] sm:$0xff]  }
 0xdc4   :  { %v1365_v37 = vpop.xlane.xlu0 %1364 }
 0xdc5   :  { %v1369_v54 = vmul.f32 0.03125, %v1365_v37  ;;  %v4069_v37 = vld [vmem:[%s5243_s11 + $0x88] sm:$0xff]  }
 0xdc6   :  { %v1368_v55 = vpop.xlane.xlu1 %1367 }
 0xdc7   :  { %v1371_v56 = vadd.f32 1e-05, %v1369_v54  ;;  %v1370_v57 = vmul.f32 0.03125, %v1368_v55  ;;  %v4070_v54 = vld [vmem:[%s5243_s11 + $0x50] sm:$0xff]  }
 0xdc8   :  { %v4071_v55 = vld [vmem:[%s5243_s11 + $0xd0] sm:$0xff]  }
 0xdc9   :  { %4222 = vrsqrt.f32 %v1371_v56  ;;  %v1372_v58 = vadd.f32 1e-05, %v1370_v57  ;;  %v4072_v56 = vld [vmem:[%s5243_s11 + $0x10] sm:$0xff]  }
 0xdca   :  { %v4073_v57 = vld [vmem:[%s5243_s11 + $0x90] sm:$0xff]  }
 0xdcb   :  { %4224 = vrsqrt.f32 %v1372_v58  ;;  %v4074_v58 = vld [vmem:[%s5243_s11 + $0x58] sm:$0xff]  }
 0xdd3   :  { %v4223_v59 = vpop.eup %4222 }
 0xdd4   :  { %v1375_v61 = vmul.f32 %v4223_v59, %v1359_v21  ;;  %v1422_v21 = vld [vmem:[%s5241_s9 + $0xe0] sm:$0xff]  ;;  %v4075_v59 = vld [vmem:[%s5243_s11 + $0xd8] sm:$0xff]  }
 0xdd5   :  { %v4225_v62 = vpop.eup %4224  ;;  %v3534_v28 = vcombine.high %v1414_v20, %v1422_v21  ;;  %v3533_v35 = vcombine.low %v1414_v20, %v1422_v21  ;;  %v4847_v21 = vld [vmem:[%s5242_s10 + $0x8] sm:$0xff] }
 0xdd6   :  { %v1383_v63 = vmul.f32 %v3507_v60, %v1375_v61  ;;  %v1376_v1 = vmul.f32 %v4225_v62, %v1360_v24  ;;  %v1423_v24 = vld [vmem:[%s5241_s9 + $0xe8] sm:$0xff]  ;;  %v4077_v61 = vld [vmem:[%s5243_s11 + $0x98] sm:$0xff]   ;;  %v4078_v62 = vld [vmem:[%s5243_s11 + $0x60] sm:$0xff]  }
 0xdd7   :  { %v3536_v29 = vcombine.high %v1415_v23, %v1423_v24  ;;  %v3535_v17 = vcombine.low %v1415_v23, %v1423_v24 }
 0xdd8   :  { %v1384_v27 = vmul.f32 %v3507_v60, %v1376_v1  ;;  %v4661_v6 = vadd.f32 %v3508_v0, %v1383_v63  ;;  %v4076_v60 = vld [vmem:[%s5243_s11 + $0x18] sm:$0xff]   ;;  %v4079_v63 = vld [vmem:[%s5243_s11 + $0xe0] sm:$0xff]  }
 0xdd9   :  { %v4080_v1 = vld [vmem:[%s5243_s11 + $0x20] sm:$0xff]  }
 0xdda   :  { %v4663_v7 = vadd.f32 %v3508_v0, %v1384_v27  ;;  %v4081_v0 = vld [vmem:[%s5243_s11 + $0xa0] sm:$0xff]   ;;  %v4082_v27 = vld [vmem:[%s5243_s11 + $0x68] sm:$0xff]  }
 0xddc   :  { %v4667_v8 = vpack.c.bf16 %v4663_v7, %v4661_v6 }
 0xdde   :  { %3541 = vmatmul.mubr.msk.bf16.vlgmr.msra.gmra.mrb[44].mxu1 %vm80_vm1, %v4667_v8  ;;  %3542 = vmatmul.mubr.msk.bf16.vlgmr.msra.gmra.mrb[48].mxu0 %vm80_vm1, %v4667_v8 }
 0xddf   :  { %1760 = vmatpush1.bf16.msra.mxu1 %v3513_v38  ;;  %1803 = vmatpush1.bf16.msra.mxu0 %v3515_v52  ;;  %v4063_v38 = vld [vmem:[%s5243_s11 + $0xc0] sm:$0xff]   ;;  %v4066_v52 = vld [vmem:[%s5243_s11 + $0x48] sm:$0xff]  }
 0xde0   :  { %1761 = vmatprep.subr.bf16.mxu1 %v3530_v9  ;;  %1804 = vmatprep.subr.bf16.mxu0 %v3532_v10  ;;  %v4088_v9 = vld [vmem:[%s5243_s11 + $0x30] sm:$0xff]  }
 0xde1   :  { %1791 = vmatprep.mubr.bf16.mxu1 %v4263_v49  ;;  %1834 = vmatprep.mubr.bf16.mxu0 %v4263_v49  ;;  %v4089_v10 = vld [vmem:[%s5243_s11 + $0xb0] sm:$0xff]  }
 0xde3   :  { %1762 = vmatpush1.bf16.msra.mxu1 %v3529_v15  ;;  %1805 = vmatpush1.bf16.msra.mxu0 %v3531_v16  ;;  %v4094_v15 = vld [vmem:[%s5243_s11 + $0x140] sm:$0xff]  }
 0xde4   :  { %1845 = vmatprep.subr.bf16.mxu1 %v3518_v18  ;;  %1888 = vmatprep.subr.bf16.mxu0 %v3520_v19  ;;  %v4095_v16 = vld [vmem:[%s5243_s11 + $0x1c0] sm:$0xff]   ;;  %v1430_v18 = vlaneseq }
 0xde6   :  { %3543 = vmatmul.mubr.msk.bf16.vlgmr.msra.gmra.mrb[48].mxu1 %vm80_vm1, %v4667_v8  ;;  %3544 = vmatmul.mubr.msk.bf16.vlgmr.msra.gmra.mrb[52].mxu0 %vm80_vm1, %v4667_v8  ;;  %v4841_v19 = vshrl.u32 %v1430_v18, 7 }
 0xde7   :  { %1846 = vmatpush1.bf16.msra.mxu1 %v3517_v25  ;;  %1889 = vmatpush1.bf16.msra.mxu0 %v3519_v26  ;;  %v1426_v26 = vld [vmem:[%s5242_s10] sm:$0xff] }
 0xde8   :  { %1847 = vmatprep.subr.bf16.mxu1 %v3534_v28  ;;  %1890 = vmatprep.subr.bf16.mxu0 %v3536_v29  ;;  %v1456_v20 = vsub.s32 6, %v4841_v19  ;;  %v1432_v24 = vsub.s32 0, %v4841_v19  ;;  %v1440_v25 = vsub.s32 2, %v4841_v19  ;;  %v1436_v28 = vsub.s32 1, %v4841_v19 }
 0xde9   :  { %1877 = vmatprep.mubr.bf16.mxu1 %v4263_v49  ;;  %1920 = vmatprep.mubr.bf16.mxu0 %v4263_v49  ;;  %v1444_v29 = vsub.s32 3, %v4841_v19  ;;  %v1460_v41 = vsub.s32 7, %v4841_v19 }
 0xdea   :  { %v4850_v23 = vrot.slane %v4847_v21, %v1456_v20  ;;  %v1433_v30 = vrot.slane %v1426_v26, %v1432_v24  ;;  %v1441_v31 = vrot.slane %v1426_v26, %v1440_v25  ;;  %v1437_v33 = vrot.slane %v1426_v26, %v1436_v28 }
 0xdeb   :  { %1848 = vmatpush1.bf16.msra.mxu1 %v3533_v35  ;;  %1891 = vmatpush1.bf16.msra.mxu0 %v3535_v17  ;;  %v1445_v34 = vrot.slane %v1426_v26, %v1444_v29  ;;  %v1448_v35 = vsub.s32 4, %v4841_v19 }
 0xdec   :  { %1931 = vmatprep.subr.bf16.mxu1 %v3522_v39  ;;  %1974 = vmatprep.subr.bf16.mxu0 %v3524_v22  ;;  %v1452_v22 = vsub.s32 5, %v4841_v19 }
 0xdee   :  { %3545 = vmatmul.mubr.msk.bf16.vlgmr.msra.gmra.mrb[52].mxu1 %vm80_vm1, %v4667_v8  ;;  %3546 = vmatmul.mubr.msk.bf16.vlgmr.msra.gmra.mrb[56].mxu0 %vm80_vm1, %v4667_v8 }
 0xdef   :  { %1932 = vmatpush1.bf16.msra.mxu1 %v3521_v44  ;;  %1975 = vmatpush1.bf16.msra.mxu0 %v3523_v45 }
 0xdf0   :  { %1933 = vmatprep.subr.bf16.mxu1 %v3538_v36  ;;  %1976 = vmatprep.subr.bf16.mxu0 %v3540_v40 }
 0xdf1   :  { %1963 = vmatprep.mubr.bf16.mxu1 %v4263_v49  ;;  %2006 = vmatprep.mubr.bf16.mxu0 %v4263_v49  ;;  %v4067_v49 = vld [vmem:[%s5243_s11 + $0xc8] sm:$0xff]  }
 0xdf3   :  { %1934 = vmatpush1.bf16.msra.mxu1 %v3537_v46  ;;  %1977 = vmatpush1.bf16.msra.mxu0 %v3539_v47 }
 0xdf4   :  { %3727 = vmatprep.subr.bf16.mxu1 %v4062_v48  ;;  %3749 = vmatprep.subr.bf16.mxu0 %v4063_v38 }
 0xdf6   :  { %3547 = vmatmul.mubr.msk.bf16.vlgmr.msra.gmra.mrb[56].mxu1 %vm80_vm1, %v4667_v8  ;;  %3548 = vmatmul.mubr.msk.bf16.vlgmr.msra.gmra.mrb[60].mxu0 %vm80_vm1, %v4667_v8  ;;  %v4087_v8 = vld [vmem:[%s5243_s11 + $0xf0] sm:$0xff]  }
 0xdf7   :  { %3728 = vmatpush3.bf16.msra.mxu1 %v4064_v50  ;;  %3750 = vmatpush3.bf16.msra.mxu0 %v4065_v51  ;;  %v1449_v51 = vrot.slane %v1426_v26, %v1448_v35 }
 0xdf8   :  { %3729 = vmatprep.subr.bf16.mxu1 %v4066_v52  ;;  %3751 = vmatprep.subr.bf16.mxu0 %v4067_v49  ;;  %v1457_v52 = vrot.slane %v1426_v26, %v1456_v20 }
 0xdfb   :  { %3730 = vmatpush3.bf16.msra.mxu1 %v4068_v53  ;;  %3752 = vmatpush3.bf16.msra.mxu0 %v4069_v37  ;;  %v1453_v37 = vrot.slane %v1426_v26, %v1452_v22 }
 0xdfc   :  { %3731 = vmatprep.subr.bf16.mxu1 %v4070_v54  ;;  %3753 = vmatprep.subr.bf16.mxu0 %v4071_v55  ;;  %v1461_v54 = vrot.slane %v1426_v26, %v1460_v41  ;;  %v1473_v26 = vrot.slane %v4847_v21, %v1440_v25  ;;  %v4101_v25 = vld [vmem:[%s5243_s11 + $0x188] sm:$0xff]  }
 0xdff   :  { %3732 = vmatpush3.bf16.msra.mxu1 %v4072_v56  ;;  %3754 = vmatpush3.bf16.msra.mxu0 %v4073_v57 }
 0xe00   :  { %3733 = vmatprep.subr.bf16.mxu1 %v4074_v58  ;;  %3755 = vmatprep.subr.bf16.mxu0 %v4075_v59 }
 0xe03   :  { %3734 = vmatpush3.bf16.msra.mxu1 %v4076_v60  ;;  %3756 = vmatpush3.bf16.msra.mxu0 %v4077_v61 }
 0xe04   :  { %3735 = vmatprep.subr.bf16.mxu1 %v4078_v62  ;;  %3757 = vmatprep.subr.bf16.mxu0 %v4079_v63 }
 0xe07   :  { %3736 = vmatpush3.bf16.msra.mxu1 %v4080_v1  ;;  %3758 = vmatpush3.bf16.msra.mxu0 %v4081_v0 }
 0xe08   :  { %3737 = vmatprep.subr.bf16.mxu1 %v4082_v27  ;;  %3759 = vmatprep.subr.bf16.mxu0 %v4083_v2 }
 0xe0b   :  { %3738 = vmatpush3.bf16.msra.mxu1 %v4084_v3  ;;  %3760 = vmatpush3.bf16.msra.mxu0 %v4085_v4  ;;  %v4096_v4 = vld [vmem:[%s5243_s11 + $0x100] sm:$0xff]  }
 0xe0c   :  { %3739 = vmatprep.subr.bf16.mxu1 %v4086_v5  ;;  %3761 = vmatprep.subr.bf16.mxu0 %v4087_v8  ;;  %v4097_v5 = vld [vmem:[%s5243_s11 + $0x180] sm:$0xff]  }
 0xe0f   :  { %3740 = vmatpush3.bf16.msra.mxu1 %v4088_v9  ;;  %3762 = vmatpush3.bf16.msra.mxu0 %v4089_v10 }
 0xe10   :  { %3741 = vmatprep.subr.bf16.mxu1 %v4090_v11  ;;  %3763 = vmatprep.subr.bf16.mxu0 %v4091_v12  ;;  %v4098_v12 = vld [vmem:[%s5243_s11 + $0x148] sm:$0xff]  }
 0xe13   :  { %3742 = vmatpush3.bf16.msra.mxu1 %v4092_v13  ;;  %3764 = vmatpush3.bf16.msra.mxu0 %v4093_v14  ;;  %v4099_v13 = vld [vmem:[%s5243_s11 + $0x1c8] sm:$0xff]   ;;  %v1465_v14 = vrot.slane %v4847_v21, %v1432_v24 }
 0xe14   :  { %3771 = vmatprep.subr.bf16.mxu1 %v4094_v15  ;;  %3793 = vmatprep.subr.bf16.mxu0 %v4095_v16 }
 0xeb1   :  { %v1707_v17 = vpop.f32.mrb[44].mxu1  ;;  %v1750_v39 = vpop.f32.mrb[48].mxu0 }
 0xeb2   :  { %v1708_v32 = vadd.f32 %v1707_v17, %v1433_v30  ;;  %v1751_v42 = vadd.f32 %v1750_v39, %v1441_v31  ;;  %v1709_v43 = vpop.f32.mrb[45].mxu1  ;;  %v1752_v44 = vpop.f32.mrb[49].mxu0  ;;  %v1469_v17 = vrot.slane %v4847_v21, %v1436_v28 }
 0xeb3   :  { %v1710_v45 = vadd.f32 %v1709_v43, %v1437_v33  ;;  %v1753_v36 = vadd.f32 %v1752_v44, %v1445_v34  ;;  %v1711_v40 = vpop.f32.mrb[46].mxu1  ;;  %v1754_v46 = vpop.f32.mrb[50].mxu0 }
 0xeb4   :  { %v1712_v47 = vadd.f32 %v1711_v40, %v1433_v30  ;;  %v1755_v48 = vadd.f32 %v1754_v46, %v1441_v31  ;;  %v1713_v38 = vpop.f32.mrb[47].mxu1  ;;  %v1756_v50 = vpop.f32.mrb[51].mxu0  ;;  %v2017_v55 = vmax.f32 %v1708_v32, 0.0  ;;  %v2019_v56 = vmax.f32 %v1751_v42, 0.0  ;;  %v4100_v32 = vld [vmem:[%s5243_s11 + $0x108] sm:$0xff]   ;;  %v4103_v40 = vld [vmem:[%s5243_s11 + $0x1d0] sm:$0xff]  }
 0xeb5   :  { %v1714_v49 = vadd.f32 %v1713_v38, %v1437_v33  ;;  %v1757_v53 = vadd.f32 %v1756_v50, %v1445_v34  ;;  %v2018_v59 = vmax.f32 %v1710_v45, 0.0  ;;  %v2020_v60 = vmax.f32 %v1753_v36, 0.0  ;;  %v4102_v36 = vld [vmem:[%s5243_s11 + $0x150] sm:$0xff]  }
 0xeb6   :  { %v2033_v57 = vmax.f32 %v1712_v47, 0.0  ;;  %v2035_v58 = vmax.f32 %v1755_v48, 0.0  ;;  %v1477_v42 = vrot.slane %v4847_v21, %v1444_v29 }
 0xeb7   :  { %v2034_v61 = vmax.f32 %v1714_v49, 0.0  ;;  %v2036_v62 = vmax.f32 %v1757_v53, 0.0 }
 0xeb8   :  { %v2049_v63 = vpack.c.bf16 %v2033_v57, %v2017_v55  ;;  %v2051_v1 = vpack.c.bf16 %v2035_v58, %v2019_v56 }
 0xeb9   :  { %v2050_v0 = vpack.c.bf16 %v2034_v61, %v2018_v59  ;;  %v2052_v27 = vpack.c.bf16 %v2036_v62, %v2020_v60  ;;  %v1793_v2 = vpop.f32.mrb[48].mxu1  ;;  %v1836_v3 = vpop.f32.mrb[52].mxu0  ;;  %v4106_v59 = vld [vmem:[%s5243_s11 + $0x158] sm:$0xff]  }
 0xeba   :  { %v1794_v8 = vadd.f32 %v1793_v2, %v1449_v51  ;;  %v1837_v9 = vadd.f32 %v1836_v3, %v1457_v52  ;;  %v1795_v10 = vpop.f32.mrb[49].mxu1  ;;  %v1838_v11 = vpop.f32.mrb[53].mxu0  ;;  %v4107_v60 = vld [vmem:[%s5243_s11 + $0x1d8] sm:$0xff]  }
 0xebb   :  { %v1796_v15 = vadd.f32 %v1795_v10, %v1453_v37  ;;  %v1839_v16 = vadd.f32 %v1838_v11, %v1461_v54  ;;  %v1797_v18 = vpop.f32.mrb[50].mxu1  ;;  %v1840_v20 = vpop.f32.mrb[54].mxu0  ;;  %3128 = vmatprep.mubr.bf16.mxu1 %v2050_v0  ;;  %3169 = vmatprep.mubr.bf16.mxu0 %v2052_v27  ;;  %v4108_v10 = vld [vmem:[%s5243_s11 + $0x118] sm:$0xff]  }
 0xebc   :  { %v1798_v30 = vadd.f32 %v1797_v18, %v1449_v51  ;;  %v1841_v31 = vadd.f32 %v1840_v20, %v1457_v52  ;;  %v1799_v33 = vpop.f32.mrb[51].mxu1  ;;  %v1842_v34 = vpop.f32.mrb[55].mxu0  ;;  %3129 = vmatmul.mubr.bf16.vlgmr.msra.gmra.mrb[60].mxu1 %v2049_v63  ;;  %3170 = vmatmul.mubr.bf16.vlgmr.msra.gmra.mrb[64].mxu0 %v2051_v1  ;;  %v2021_v43 = vmax.f32 %v1794_v8, 0.0  ;;  %v2023_v44 = vmax.f32 %v1837_v9, 0.0  ;;  %v4109_v11 = vld [vmem:[%s5243_s11 + $0x198] sm:$0xff]  }
 0xebd   :  { %v1800_v39 = vadd.f32 %v1799_v33, %v1453_v37  ;;  %v1843_v24 = vadd.f32 %v1842_v34, %v1461_v54  ;;  %3772 = vmatpush3.bf16.msra.mxu1 %v4096_v4  ;;  %3794 = vmatpush3.bf16.msra.mxu0 %v4097_v5  ;;  %v2022_v46 = vmax.f32 %v1796_v15, 0.0  ;;  %v2024_v47 = vmax.f32 %v1839_v16, 0.0  ;;  %v4104_v37 = vld [vmem:[%s5243_s11 + $0x110] sm:$0xff]   ;;  %v4110_v15 = vld [vmem:[%s5243_s11 + $0x160] sm:$0xff]  }
 0xebe   :  { %v2037_v45 = vmax.f32 %v1798_v30, 0.0  ;;  %v2039_v28 = vmax.f32 %v1841_v31, 0.0  ;;  %3773 = vmatprep.subr.bf16.mxu1 %v4098_v12  ;;  %3795 = vmatprep.subr.bf16.mxu0 %v4099_v13  ;;  %v4105_v54 = vld [vmem:[%s5243_s11 + $0x190] sm:$0xff]   ;;  %v1481_v4 = vrot.slane %v4847_v21, %v1448_v35  ;;  %v1485_v5 = vrot.slane %v4847_v21, %v1452_v22  ;;  %v4111_v16 = vld [vmem:[%s5243_s11 + $0x1e0] sm:$0xff]  }
 0xebf   :  { %v2038_v48 = vmax.f32 %v1800_v39, 0.0  ;;  %v2040_v38 = vmax.f32 %v1843_v24, 0.0  ;;  %v1493_v35 = vrot.slane %v4847_v21, %v1460_v41  ;;  %v4113_v39 = vld [vmem:[%s5243_s11 + $0x1a0] sm:$0xff]  }
 0xec0   :  { %v4904_v50 = vpack.c.bf16 %v2037_v45, %v2021_v43  ;;  %v4906_v29 = vpack.c.bf16 %v2039_v28, %v2023_v44  ;;  %v4114_v43 = vld [vmem:[%s5243_s11 + $0x168] sm:$0xff]  }
 0xec1   :  { %v2054_v51 = vpack.c.bf16 %v2038_v48, %v2022_v46  ;;  %v2056_v52 = vpack.c.bf16 %v2040_v38, %v2024_v47  ;;  %3774 = vmatpush3.bf16.msra.mxu1 %v4100_v32  ;;  %3796 = vmatpush3.bf16.msra.mxu0 %v4101_v25  ;;  %v1879_v49 = vpop.f32.mrb[52].mxu1  ;;  %v1922_v53 = vpop.f32.mrb[56].mxu0  ;;  %v4115_v44 = vld [vmem:[%s5243_s11 + $0x1e8] sm:$0xff]  }
 0xec2   :  { %v1880_v55 = vadd.f32 %v1879_v49, %v1465_v14  ;;  %v1923_v56 = vadd.f32 %v1922_v53, %v1473_v26  ;;  %v1881_v57 = vpop.f32.mrb[53].mxu1  ;;  %v1924_v58 = vpop.f32.mrb[57].mxu0  ;;  %3775 = vmatprep.subr.bf16.mxu1 %v4102_v36  ;;  %3797 = vmatprep.subr.bf16.mxu0 %v4103_v40  ;;  %v4116_v49 = vld [vmem:[%s5243_s11 + $0x128] sm:$0xff]  }
 0xec3   :  { %v1882_v61 = vadd.f32 %v1881_v57, %v1469_v17  ;;  %v1925_v62 = vadd.f32 %v1924_v58, %v1477_v42  ;;  %v1883_v63 = vpop.f32.mrb[54].mxu1  ;;  %v1926_v1 = vpop.f32.mrb[58].mxu0  ;;  %3210 = vmatprep.mubr.bf16.mxu1 %v2054_v51  ;;  %3251 = vmatprep.mubr.bf16.mxu0 %v2056_v52  ;;  %v4117_v53 = vld [vmem:[%s5243_s11 + $0x1a8] sm:$0xff]   ;;  %v4119_v57 = vld [vmem:[%s5243_s11 + $0x1f0] sm:$0xff]  }
 0xec4   :  { %v1884_v0 = vadd.f32 %v1883_v63, %v1465_v14  ;;  %v1927_v27 = vadd.f32 %v1926_v1, %v1473_v26  ;;  %v1885_v2 = vpop.f32.mrb[55].mxu1  ;;  %v1928_v3 = vpop.f32.mrb[59].mxu0  ;;  %v2025_v12 = vmax.f32 %v1880_v55, 0.0  ;;  %v2027_v13 = vmax.f32 %v1923_v56, 0.0 }
 0xec5   :  { %v1886_v8 = vadd.f32 %v1885_v2, %v1469_v17  ;;  %v1929_v9 = vadd.f32 %v1928_v3, %v1477_v42  ;;  %3776 = vmatpush3.bf16.msra.mxu1 %v4104_v37  ;;  %3798 = vmatpush3.bf16.msra.mxu0 %v4105_v54  ;;  %v2026_v18 = vmax.f32 %v1882_v61, 0.0  ;;  %v2028_v20 = vmax.f32 %v1925_v62, 0.0  ;;  %v4112_v17 = vld [vmem:[%s5243_s11 + $0x120] sm:$0xff]   ;;  %v4121_v2 = vld [vmem:[%s5243_s11 + $0x1b0] sm:$0xff]   ;;  %v4122_v3 = vld [vmem:[%s5243_s11 + $0x178] sm:$0xff]  }
 0xec6   :  { %v2041_v14 = vmax.f32 %v1884_v0, 0.0  ;;  %v2043_v22 = vmax.f32 %v1927_v27, 0.0  ;;  %3777 = vmatprep.subr.bf16.mxu1 %v4106_v59  ;;  %3799 = vmatprep.subr.bf16.mxu0 %v4107_v60  ;;  %v4120_v27 = vld [vmem:[%s5243_s11 + $0x130] sm:$0xff]  }
 0xec7   :  { %v2042_v26 = vmax.f32 %v1886_v8, 0.0  ;;  %v2044_v19 = vmax.f32 %v1929_v9, 0.0  ;;  %v4125_v8 = vld [vmem:[%s5243_s11 + $0x1b8] sm:$0xff]   ;;  %v4126_v9 = vld [vmem:[%s5243_s11 + $0x240] sm:$0xff]  }
 0xec8   :  { %v4941_v30 = vpack.c.bf16 %v2041_v14, %v2025_v12  ;;  %v4943_v21 = vpack.c.bf16 %v2043_v22, %v2027_v13  ;;  %v4130_v12 = vld [vmem:[%s5243_s11 + $0x248] sm:$0xff]  }
 0xec9   :  { %v4945_v41 = vpack.c.bf16 %v2042_v26, %v2026_v18  ;;  %v4947_v31 = vpack.c.bf16 %v2044_v19, %v2028_v20  ;;  %3778 = vmatpush3.bf16.msra.mxu1 %v4108_v10  ;;  %3800 = vmatpush3.bf16.msra.mxu0 %v4109_v11  ;;  %v1965_v33 = vpop.f32.mrb[56].mxu1  ;;  %v2008_v34 = vpop.f32.mrb[60].mxu0  ;;  %v4127_v10 = vld [vmem:[%s5243_s11 + $0x2c0] sm:$0xff]   ;;  %v4131_v13 = vld [vmem:[%s5243_s11 + $0x2c8] sm:$0xff]   ;;  %v4138_v18 = vld [vmem:[%s5243_s11 + $0x258] sm:$0xff]  }
 0xeca   :  { %v1966_v24 = vadd.f32 %v1965_v33, %v1481_v4  ;;  %v2009_v32 = vadd.f32 %v2008_v34, %v4850_v23  ;;  %v1967_v25 = vpop.f32.mrb[57].mxu1  ;;  %v2010_v42 = vpop.f32.mrb[61].mxu0  ;;  %3779 = vmatprep.subr.bf16.mxu1 %v4110_v15  ;;  %3801 = vmatprep.subr.bf16.mxu0 %v4111_v16  ;;  %v4128_v11 = vld [vmem:[%s5243_s11 + $0x200] sm:$0xff]   ;;  %v4132_v14 = vld [vmem:[%s5243_s11 + $0x208] sm:$0xff]   ;;  %v4136_v15 = vld [vmem:[%s5243_s11 + $0x210] sm:$0xff]  }
 0xecb   :  { %v1968_v45 = vadd.f32 %v1967_v25, %v1485_v5  ;;  %v2011_v28 = vadd.f32 %v2010_v42, %v1493_v35  ;;  %v1969_v36 = vpop.f32.mrb[58].mxu1  ;;  %v2012_v40 = vpop.f32.mrb[62].mxu0  ;;  %v4133_v22 = vld [vmem:[%s5243_s11 + $0x288] sm:$0xff]   ;;  %v4137_v16 = vld [vmem:[%s5243_s11 + $0x290] sm:$0xff]   ;;  %v4139_v20 = vld [vmem:[%s5243_s11 + $0x2d8] sm:$0xff]  }
 0xecc   :  { %v1970_v46 = vadd.f32 %v1969_v36, %v1481_v4  ;;  %v2013_v47 = vadd.f32 %v2012_v40, %v4850_v23  ;;  %v1971_v48 = vpop.f32.mrb[59].mxu1  ;;  %v2014_v38 = vpop.f32.mrb[63].mxu0  ;;  %v2029_v37 = vmax.f32 %v1966_v24, 0.0  ;;  %v2031_v54 = vmax.f32 %v2009_v32, 0.0  ;;  %v4118_v23 = vld [vmem:[%s5243_s11 + $0x170] sm:$0xff]   ;;  %v4123_v4 = vld [vmem:[%s5243_s11 + $0x1f8] sm:$0xff]  }
 0xecd   :  { %v1972_v51 = vadd.f32 %v1971_v48, %v1485_v5  ;;  %v2015_v52 = vadd.f32 %v2014_v38, %v1493_v35  ;;  %3780 = vmatpush3.bf16.msra.mxu1 %v4112_v17  ;;  %3802 = vmatpush3.bf16.msra.mxu0 %v4113_v39  ;;  %v2030_v58 = vmax.f32 %v1968_v45, 0.0  ;;  %v2032_v59 = vmax.f32 %v2011_v28, 0.0  ;;  %v4124_v5 = vld [vmem:[%s5243_s11 + $0x138] sm:$0xff]   ;;  %v4129_v35 = vld [vmem:[%s5243_s11 + $0x280] sm:$0xff]   ;;  %v4146_v17 = vld [vmem:[%s5243_s11 + $0x268] sm:$0xff]  }
 0xece   :  { %v2045_v55 = vmax.f32 %v1970_v46, 0.0  ;;  %v2047_v56 = vmax.f32 %v2013_v47, 0.0  ;;  %3781 = vmatprep.subr.bf16.mxu1 %v4114_v43  ;;  %3803 = vmatprep.subr.bf16.mxu0 %v4115_v44  ;;  %v4140_v26 = vld [vmem:[%s5243_s11 + $0x218] sm:$0xff]   ;;  %v4144_v33 = vld [vmem:[%s5243_s11 + $0x220] sm:$0xff]   ;;  %v4147_v39 = vld [vmem:[%s5243_s11 + $0x2e8] sm:$0xff]  }
 0xecf   :  { %v2046_v60 = vmax.f32 %v1972_v51, 0.0  ;;  %v2048_v61 = vmax.f32 %v2015_v52, 0.0  ;;  %v4141_v19 = vld [vmem:[%s5243_s11 + $0x298] sm:$0xff]   ;;  %v4145_v34 = vld [vmem:[%s5243_s11 + $0x2a0] sm:$0xff]   ;;  %v4148_v24 = vld [vmem:[%s5243_s11 + $0x228] sm:$0xff]  }
 0xed0   :  { %v4975_v62 = vpack.c.bf16 %v2045_v55, %v2029_v37  ;;  %v4977_v63 = vpack.c.bf16 %v2047_v56, %v2031_v54  ;;  %v4149_v32 = vld [vmem:[%s5243_s11 + $0x2a8] sm:$0xff]   ;;  %v4150_v25 = vld [vmem:[%s5243_s11 + $0x270] sm:$0xff]   ;;  %v4154_v45 = vld [vmem:[%s5243_s11 + $0x278] sm:$0xff]  }
 0xed1   :  { %v4979_v1 = vpack.c.bf16 %v2046_v60, %v2030_v58  ;;  %v4981_v0 = vpack.c.bf16 %v2048_v61, %v2032_v59  ;;  %3782 = vmatpush3.bf16.msra.mxu1 %v4116_v49  ;;  %3804 = vmatpush3.bf16.msra.mxu0 %v4117_v53  ;;  %v4151_v42 = vld [vmem:[%s5243_s11 + $0x2f0] sm:$0xff]   ;;  %v4155_v28 = vld [vmem:[%s5243_s11 + $0x2f8] sm:$0xff]   ;;  %v4158_v46 = vld [vmem:[%s5243_s11 + $0x340] sm:$0xff]  }
 0xed2   :  { %3783 = vmatprep.subr.bf16.mxu1 %v4118_v23  ;;  %3805 = vmatprep.subr.bf16.mxu0 %v4119_v57  ;;  %v4152_v43 = vld [vmem:[%s5243_s11 + $0x230] sm:$0xff]   ;;  %v4156_v36 = vld [vmem:[%s5243_s11 + $0x238] sm:$0xff]   ;;  %v4159_v47 = vld [vmem:[%s5243_s11 + $0x3c0] sm:$0xff]  }
 0xed3   :  { %v4153_v44 = vld [vmem:[%s5243_s11 + $0x2b0] sm:$0xff]   ;;  %v4157_v40 = vld [vmem:[%s5243_s11 + $0x2b8] sm:$0xff]   ;;  %v4160_v48 = vld [vmem:[%s5243_s11 + $0x300] sm:$0xff]  }
 0xed4   :  { %v4161_v38 = vld [vmem:[%s5243_s11 + $0x380] sm:$0xff]   ;;  %v4162_v51 = vld [vmem:[%s5243_s11 + $0x348] sm:$0xff]   ;;  %v4168_v37 = vld [vmem:[%s5243_s11 + $0x310] sm:$0xff]  }
 0xed5   :  { %3784 = vmatpush3.bf16.msra.mxu1 %v4120_v27  ;;  %3806 = vmatpush3.bf16.msra.mxu0 %v4121_v2  ;;  %v4163_v52 = vld [vmem:[%s5243_s11 + $0x3c8] sm:$0xff]   ;;  %v4169_v54 = vld [vmem:[%s5243_s11 + $0x390] sm:$0xff]   ;;  %v4170_v55 = vld [vmem:[%s5243_s11 + $0x358] sm:$0xff]  }
 0xed6   :  { %3785 = vmatprep.subr.bf16.mxu1 %v4122_v3  ;;  %3807 = vmatprep.subr.bf16.mxu0 %v4123_v4  ;;  %v4164_v49 = vld [vmem:[%s5243_s11 + $0x308] sm:$0xff]   ;;  %v4171_v56 = vld [vmem:[%s5243_s11 + $0x3d8] sm:$0xff]   ;;  %v4174_v58 = vld [vmem:[%s5243_s11 + $0x360] sm:$0xff]  }
 0xed7   :  { %v4165_v53 = vld [vmem:[%s5243_s11 + $0x388] sm:$0xff]   ;;  %v4172_v23 = vld [vmem:[%s5243_s11 + $0x318] sm:$0xff]   ;;  %v4175_v59 = vld [vmem:[%s5243_s11 + $0x3e0] sm:$0xff]  }
 0xed8   :  { %v4173_v57 = vld [vmem:[%s5243_s11 + $0x398] sm:$0xff]   ;;  %v4176_v60 = vld [vmem:[%s5243_s11 + $0x320] sm:$0xff]   ;;  %v4180_v27 = vld [vmem:[%s5243_s11 + $0x328] sm:$0xff]  }
 0xed9   :  { %3786 = vmatpush3.bf16.msra.mxu1 %v4124_v5  ;;  %3808 = vmatpush3.bf16.msra.mxu0 %v4125_v8  ;;  %v4177_v61 = vld [vmem:[%s5243_s11 + $0x3a0] sm:$0xff]   ;;  %v4181_v2 = vld [vmem:[%s5243_s11 + $0x3a8] sm:$0xff]   ;;  %v4182_v3 = vld [vmem:[%s5243_s11 + $0x370] sm:$0xff]  }
 0xeda   :  { %3815 = vmatprep.subr.bf16.mxu1 %v4126_v9  ;;  %3837 = vmatprep.subr.bf16.mxu0 %v4127_v10  ;;  %v4183_v4 = vld [vmem:[%s5243_s11 + $0x3f0] sm:$0xff]   ;;  %v4186_v9 = vld [vmem:[%s5243_s11 + $0x378] sm:$0xff]  }
 0xedb   :  { %v4184_v5 = vld [vmem:[%s5243_s11 + $0x330] sm:$0xff]   ;;  %v4187_v10 = vld [vmem:[%s5243_s11 + $0x3f8] sm:$0xff]  }
 0xedc   :  { %3211 = vmatmul.mubr.bf16.vlgmr.msra.gmra.mrb[64].mxu1 %v4904_v50  ;;  %3252 = vmatmul.mubr.bf16.vlgmr.msra.gmra.mrb[68].mxu0 %v4906_v29  ;;  %v4134_v50 = vld [vmem:[%s5243_s11 + $0x250] sm:$0xff]  }
 0xedd   :  { %3816 = vmatpush3.bf16.msra.mxu1 %v4128_v11  ;;  %3292 = vmatprep.mubr.bf16.mxu1 %v4945_v41  ;;  %v4135_v29 = vld [vmem:[%s5243_s11 + $0x2d0] sm:$0xff]   ;;  %v4142_v41 = vld [vmem:[%s5243_s11 + $0x260] sm:$0xff]   ;;  %v4188_v11 = vld [vmem:[%s5243_s11 + $0x338] sm:$0xff]  }
 0xede   :  { %3838 = vmatpush3.bf16.msra.mxu0 %v4129_v35  ;;  %3333 = vmatprep.mubr.bf16.mxu0 %v4947_v31  ;;  %v4143_v31 = vld [vmem:[%s5243_s11 + $0x2e0] sm:$0xff]   ;;  %v4185_v8 = vld [vmem:[%s5243_s11 + $0x3b0] sm:$0xff]   ;;  %v4189_v35 = vld [vmem:[%s5243_s11 + $0x3b8] sm:$0xff]  }
 0xedf   :  { %3817 = vmatprep.subr.bf16.mxu1 %v4130_v12  ;;  %3839 = vmatprep.subr.bf16.mxu0 %v4131_v13 }
 0xee1   :  { %3818 = vmatpush3.bf16.msra.mxu1 %v4132_v14  ;;  %v3549_v14 = vld [vmem:[%s5244_s12] ss:$0 sm:$0xff] }
 0xee2   :  { %3840 = vmatpush3.bf16.msra.mxu0 %v4133_v22  ;;  %3819 = vmatprep.subr.bf16.mxu1 %v4134_v50 }
 0xee3   :  { %3841 = vmatprep.subr.bf16.mxu0 %v4135_v29 }
 0xee5   :  { %3820 = vmatpush3.bf16.msra.mxu1 %v4136_v15 }
 0xee6   :  { %3842 = vmatpush3.bf16.msra.mxu0 %v4137_v16  ;;  %3821 = vmatprep.subr.bf16.mxu1 %v4138_v18 }
 0xee7   :  { %3843 = vmatprep.subr.bf16.mxu0 %v4139_v20 }
 0xee9   :  { %3822 = vmatpush3.bf16.msra.mxu1 %v4140_v26 }
 0xeea   :  { %3844 = vmatpush3.bf16.msra.mxu0 %v4141_v19  ;;  %3823 = vmatprep.subr.bf16.mxu1 %v4142_v41 }
 0xeeb   :  { %3845 = vmatprep.subr.bf16.mxu0 %v4143_v31 }
 0xeed   :  { %3824 = vmatpush3.bf16.msra.mxu1 %v4144_v33 }
 0xeee   :  { %3846 = vmatpush3.bf16.msra.mxu0 %v4145_v34  ;;  %3825 = vmatprep.subr.bf16.mxu1 %v4146_v17 }
 0xeef   :  { %3847 = vmatprep.subr.bf16.mxu0 %v4147_v39 }
 0xef1   :  { %3826 = vmatpush3.bf16.msra.mxu1 %v4148_v24 }
 0xef2   :  { %3848 = vmatpush3.bf16.msra.mxu0 %v4149_v32  ;;  %3827 = vmatprep.subr.bf16.mxu1 %v4150_v25 }
 0xef3   :  { %3849 = vmatprep.subr.bf16.mxu0 %v4151_v42 }
 0xef5   :  { %3828 = vmatpush3.bf16.msra.mxu1 %v4152_v43 }
 0xef6   :  { %3850 = vmatpush3.bf16.msra.mxu0 %v4153_v44  ;;  %3829 = vmatprep.subr.bf16.mxu1 %v4154_v45 }
 0xef7   :  { %3851 = vmatprep.subr.bf16.mxu0 %v4155_v28 }
 0xef9   :  { %3830 = vmatpush3.bf16.msra.mxu1 %v4156_v36 }
 0xefa   :  { %3852 = vmatpush3.bf16.msra.mxu0 %v4157_v40  ;;  %3859 = vmatprep.subr.bf16.mxu1 %v4158_v46 }
 0xefb   :  { %3881 = vmatprep.subr.bf16.mxu0 %v4159_v47 }
 0xefc   :  { %3293 = vmatmul.mubr.bf16.vlgmr.msra.gmra.mrb[68].mxu1 %v4941_v30  ;;  %v4166_v30 = vld [vmem:[%s5243_s11 + $0x350] sm:$0xff]  }
 0xefd   :  { %3334 = vmatmul.mubr.bf16.vlgmr.msra.gmra.mrb[72].mxu0 %v4943_v21  ;;  %3860 = vmatpush3.bf16.msra.mxu1 %v4160_v48  ;;  %v4167_v21 = vld [vmem:[%s5243_s11 + $0x3d0] sm:$0xff]  }
 0xefe   :  { %3374 = vmatprep.mubr.bf16.mxu1 %v4979_v1  ;;  %3882 = vmatpush3.bf16.msra.mxu0 %v4161_v38  ;;  %v4178_v1 = vld [vmem:[%s5243_s11 + $0x368] sm:$0xff]  }
 0xeff   :  { %3415 = vmatprep.mubr.bf16.mxu0 %v4981_v0  ;;  %3861 = vmatprep.subr.bf16.mxu1 %v4162_v51  ;;  %v4179_v0 = vld [vmem:[%s5243_s11 + $0x3e8] sm:$0xff]  }
 0xf00   :  { %3883 = vmatprep.subr.bf16.mxu0 %v4163_v52 }
 0xf01   :  { %3862 = vmatpush3.bf16.msra.mxu1 %v4164_v49 }
 0xf02   :  { %3884 = vmatpush3.bf16.msra.mxu0 %v4165_v53  ;;  %3863 = vmatprep.subr.bf16.mxu1 %v4166_v30 }
 0xf03   :  { %3885 = vmatprep.subr.bf16.mxu0 %v4167_v21 }
 0xf05   :  { %3864 = vmatpush3.bf16.msra.mxu1 %v4168_v37 }
 0xf06   :  { %3886 = vmatpush3.bf16.msra.mxu0 %v4169_v54  ;;  %3865 = vmatprep.subr.bf16.mxu1 %v4170_v55 }
 0xf07   :  { %3887 = vmatprep.subr.bf16.mxu0 %v4171_v56 }
 0xf09   :  { %3866 = vmatpush3.bf16.msra.mxu1 %v4172_v23 }
 0xf0a   :  { %3888 = vmatpush3.bf16.msra.mxu0 %v4173_v57  ;;  %3867 = vmatprep.subr.bf16.mxu1 %v4174_v58 }
 0xf0b   :  { %3889 = vmatprep.subr.bf16.mxu0 %v4175_v59 }
 0xf0d   :  { %3868 = vmatpush3.bf16.msra.mxu1 %v4176_v60 }
 0xf0e   :  { %3890 = vmatpush3.bf16.msra.mxu0 %v4177_v61  ;;  %3869 = vmatprep.subr.bf16.mxu1 %v4178_v1 }
 0xf0f   :  { %3891 = vmatprep.subr.bf16.mxu0 %v4179_v0 }
 0xf11   :  { %3870 = vmatpush3.bf16.msra.mxu1 %v4180_v27 }
 0xf12   :  { %3892 = vmatpush3.bf16.msra.mxu0 %v4181_v2  ;;  %3871 = vmatprep.subr.bf16.mxu1 %v4182_v3 }
 0xf13   :  { %3893 = vmatprep.subr.bf16.mxu0 %v4183_v4 }
 0xf15   :  { %3872 = vmatpush3.bf16.msra.mxu1 %v4184_v5 }
 0xf16   :  { %3894 = vmatpush3.bf16.msra.mxu0 %v4185_v8  ;;  %3873 = vmatprep.subr.bf16.mxu1 %v4186_v9 }
 0xf17   :  { %3895 = vmatprep.subr.bf16.mxu0 %v4187_v10 }
 0xf19   :  { %3874 = vmatpush3.bf16.msra.mxu1 %v4188_v11 }
 0xf1a   :  { %3896 = vmatpush3.bf16.msra.mxu0 %v4189_v35 }
 0xf1c   :  { %3375 = vmatmul.mubr.bf16.vlgmr.msra.gmra.mrb[72].mxu1 %v4975_v62 }
 0xf1d   :  { %3416 = vmatmul.mubr.bf16.vlgmr.msra.gmra.mrb[76].mxu0 %v4977_v63 }
 0xf8f   :  { %v3743_v12 = vpop.f32.mrb[60].mxu1  ;;  %v3765_v13 = vpop.f32.mrb[64].mxu0 }
 0xf90   :  { %v3744_v22 = vpop.f32.mrb[61].mxu1  ;;  %v3766_v50 = vpop.f32.mrb[65].mxu0 }
 0xf91   :  { %v3745_v29 = vadd.f32 %v3744_v22, %v3743_v12  ;;  %v3767_v15 = vadd.f32 %v3766_v50, %v3765_v13  ;;  %v3746_v16 = vpop.f32.mrb[62].mxu1  ;;  %v3768_v18 = vpop.f32.mrb[66].mxu0 }
 0xf92   :  { %v3747_v20 = vpop.f32.mrb[63].mxu1  ;;  %v3769_v26 = vpop.f32.mrb[67].mxu0 }
 0xf93   :  { %v3131_v19 = vadd.f32 %v3745_v29, %v3549_v14  ;;  %v3748_v41 = vadd.f32 %v3747_v20, %v3746_v16  ;;  %v3770_v31 = vadd.f32 %v3769_v26, %v3768_v18 }
 0xf95   :  { %v3172_v62 = vadd.f32 %v3767_v15, %v3131_v19  ;;  %v3134_v33 = vadd.f32 %v3748_v41, %v3549_v14 }
 0xf97   :  { %v3175_v63 = vadd.f32 %v3770_v31, %v3134_v33 }
 0xfaf   :  { %v3787_v34 = vpop.f32.mrb[64].mxu1  ;;  %v3809_v17 = vpop.f32.mrb[68].mxu0 }
 0xfb0   :  { %v3788_v39 = vpop.f32.mrb[65].mxu1  ;;  %v3810_v24 = vpop.f32.mrb[69].mxu0 }
 0xfb1   :  { %v3789_v32 = vadd.f32 %v3788_v39, %v3787_v34  ;;  %v3811_v25 = vadd.f32 %v3810_v24, %v3809_v17  ;;  %v3790_v42 = vpop.f32.mrb[66].mxu1  ;;  %v3812_v43 = vpop.f32.mrb[70].mxu0 }
 0xfb2   :  { %v3791_v44 = vpop.f32.mrb[67].mxu1  ;;  %v3813_v45 = vpop.f32.mrb[71].mxu0 }
 0xfb3   :  { %v3213_v28 = vadd.f32 %v3789_v32, %v3172_v62  ;;  %v3792_v36 = vadd.f32 %v3791_v44, %v3790_v42  ;;  %v3814_v40 = vadd.f32 %v3813_v45, %v3812_v43  ;;  %v4232_v44 = vld [vmem:[%s5245_s13] ss:$0 sm:$0xff] }
 0xfb5   :  { %v3254_v46 = vadd.f32 %v3811_v25, %v3213_v28  ;;  %v3216_v47 = vadd.f32 %v3792_v36, %v3175_v63  ;;  %v4233_v36 = vld [vmem:[%s5246_s14] ss:$0 sm:$0xff] }
 0xfb7   :  { %v3257_v48 = vadd.f32 %v3814_v40, %v3216_v47 }
 0xfcf   :  { %v3831_v38 = vpop.f32.mrb[68].mxu1 }
 0xfd0   :  { %v3853_v51 = vpop.f32.mrb[72].mxu0  ;;  %v3832_v52 = vpop.f32.mrb[69].mxu1 }
 0xfd1   :  { %v3833_v49 = vadd.f32 %v3832_v52, %v3831_v38  ;;  %v3854_v53 = vpop.f32.mrb[73].mxu0  ;;  %v3834_v30 = vpop.f32.mrb[70].mxu1 }
 0xfd2   :  { %v3855_v21 = vadd.f32 %v3854_v53, %v3853_v51  ;;  %v3856_v37 = vpop.f32.mrb[74].mxu0  ;;  %v3835_v54 = vpop.f32.mrb[71].mxu1 }
 0xfd3   :  { %v3295_v55 = vadd.f32 %v3833_v49, %v3254_v46  ;;  %v3836_v56 = vadd.f32 %v3835_v54, %v3834_v30  ;;  %v3857_v23 = vpop.f32.mrb[75].mxu0 }
 0xfd4   :  { %v3858_v57 = vadd.f32 %v3857_v23, %v3856_v37 }
 0xfd5   :  { %v3336_v58 = vadd.f32 %v3855_v21, %v3295_v55  ;;  %v3298_v59 = vadd.f32 %v3836_v56, %v3257_v48 }
 0xfd7   :  { %v3339_v60 = vadd.f32 %v3858_v57, %v3298_v59 }
 0xfef   :  { %v3875_v61 = vpop.f32.mrb[72].mxu1 }
 0xff0   :  { %v3897_v1 = vpop.f32.mrb[76].mxu0  ;;  %v3876_v0 = vpop.f32.mrb[73].mxu1 }
 0xff1   :  { %v3877_v27 = vadd.f32 %v3876_v0, %v3875_v61  ;;  %v3898_v2 = vpop.f32.mrb[77].mxu0  ;;  %v3878_v3 = vpop.f32.mrb[74].mxu1 }
 0xff2   :  { %v3899_v4 = vadd.f32 %v3898_v2, %v3897_v1  ;;  %v3900_v5 = vpop.f32.mrb[78].mxu0  ;;  %v3879_v8 = vpop.f32.mrb[75].mxu1 }
 0xff3   :  { %v3377_v9 = vadd.f32 %v3877_v27, %v3336_v58  ;;  %v3880_v10 = vadd.f32 %v3879_v8, %v3878_v3  ;;  %v3901_v11 = vpop.f32.mrb[79].mxu0 }
 0xff4   :  { %v3902_v35 = vadd.f32 %v3901_v11, %v3900_v5 }
 0xff5   :  { %v3418_v12 = vadd.f32 %v3899_v4, %v3377_v9  ;;  %v3380_v13 = vadd.f32 %v3880_v10, %v3339_v60 }
 0xff7   :  { %v3421_v14 = vadd.f32 %v3902_v35, %v3380_v13  ;;  %v3424_v22 = vadd.f32 %v3418_v12, %v4661_v6 }
 0xff9   :  { %v3426_v50 = vsel %vm80_vm1, %v3424_v22, 0.0  ;;  %v3425_v29 = vadd.f32 %v3421_v14, %v4663_v7 }
 0xffa   :  { %3427 = vadd.xlane.f32.xlu0 %v3426_v50 }
 0xffb   :  { %v3429_v15 = vsel %vm80_vm1, %v3425_v29, 0.0 }
 0xffc   :  { %3430 = vadd.xlane.f32.xlu1 %v3429_v15 }
0x1087   :  { %v3428_v16 = vpop.xlane.xlu0 %3427 }
0x1088   :  { %v3432_v18 = vmul.f32 0.03125, %v3428_v16 }
0x1089   :  { %v3431_v20 = vpop.xlane.xlu1 %3430 }
0x108a   :  { %v3434_v26 = vsub.f32 %v3424_v22, %v3432_v18  ;;  %v3433_v19 = vmul.f32 0.03125, %v3431_v20 }
0x108c   :  { %v3435_v41 = vsub.f32 %v3425_v29, %v3433_v19  ;;  %v3436_v31 = vmul.f32 %v3434_v26, %v3434_v26 }
0x108e   :  { %v3438_v62 = vsel %vm80_vm1, %v3436_v31, 0.0  ;;  %v3437_v33 = vmul.f32 %v3435_v41, %v3435_v41 }
0x108f   :  { %3439 = vadd.xlane.f32.xlu0 %v3438_v62 }
0x1090   :  { %v3441_v6 = vsel %vm80_vm1, %v3437_v33, 0.0 }
0x1091   :  { %3442 = vadd.xlane.f32.xlu1 %v3441_v6 }
0x111c   :  { %v3440_v63 = vpop.xlane.xlu0 %3439 }
0x111d   :  { %v3444_v7 = vmul.f32 0.03125, %v3440_v63 }
0x111e   :  { %v3443_v34 = vpop.xlane.xlu1 %3442 }
0x111f   :  { %v3446_v17 = vadd.f32 1e-05, %v3444_v7  ;;  %v3445_v39 = vmul.f32 0.03125, %v3443_v34 }
0x1121   :  { %4226 = vrsqrt.f32 %v3446_v17  ;;  %v3447_v24 = vadd.f32 1e-05, %v3445_v39 }
0x1123   :  { %4228 = vrsqrt.f32 %v3447_v24 }
0x112b   :  { %v4227_v32 = vpop.eup %4226 }
0x112c   :  { %v3450_v25 = vmul.f32 %v4227_v32, %v3434_v26 }
0x112d   :  { %v4229_v42 = vpop.eup %4228 }
0x112e   :  { %v3451_v43 = vmul.f32 %v4229_v42, %v3435_v41  ;;  %v3452_v45 = vmul.f32 %v4232_v44, %v3450_v25 }
0x1130   :  { %v3453_v28 = vmul.f32 %v4232_v44, %v3451_v43  ;;  %v3454_v40 = vadd.f32 %v4233_v36, %v3452_v45 }
0x1132   :  { %v3455_v46 = vadd.f32 %v4233_v36, %v3453_v28  ;;  %3456 = vst.msk [vmem:[#allocation2] sm:$0xff] %vm80_vm1, %v3454_v40 }
0x1134   :  { %3457 = vst.msk [vmem:[#allocation2 + $0x8] sm:$0xff] %vm80_vm1, %v3455_v46 }
0x1135   :  { %4245 = shalt.err (!%p4242_p4)
}
0x1136   :  { %s4246_s4 = scalar_lea.hbm %s5247_s15, 256 }
0x1137   :  { %p4247_p5 = scmp.ne.s32.totalorder %s5247_s15, %s4246_s4  ;;  %p4250_p6 = scmp.lt.u32.totalorder %s4246_s4, %s5247_s15 }
0x1139   :  { %p4252_p7 = pnand %p4250_p6, %p4247_p5 }
0x113b   :  { %4255 = shalt.err (!%p4252_p7)
}
0x113c   :  { %s4265_s21 = smov 128   ;;  %s4266_s22 = smov 8  }
0x113d   :  { %3469 = dma.vmem_to_hbm [thread:$0]  %s3464_s0, 256, %s5247_s15, [#allocation3], %s4265_s21, %s4265_s21, %s4266_s22  }
0x113e   :  { %4256 = dma.done.wait [#allocation3], 256  }
0x113f   :  { %4257 = vsyncadd [#allocation3], 4294967040 }
0x1140   :  { %3473 = vsyncpa [#allocation3], 1 }

</bundles_post_ra>
